<compile_context>
chip_gen: v6e
topology: v6e:2x2x1
jax: 0.10.0
libtpu: 0.0.40
codegen_flags: <defaults>
</compile_context>

<pallas_src>
import functools
import math

import jax
import jax.numpy as jnp
from jax.experimental import pallas as pl
from jax.experimental.pallas import tpu as pltpu


def _cdiv(a, b):
    return -(-a // b)


# ----------------------------------------------------------------------------
# Fused hierarchy kernel: ALL layers for a block of TB images per grid step
# ----------------------------------------------------------------------------
def make_hierarchy_kernel(layer_dims, tb, n_saved, saved_lane_offs, mm_dtype):
    n_layers = len(layer_dims)

    def kernel(*refs):
        x_ref = refs[0]                                   # (tb*(H0+2), W0*Cin0) padded stack
        p_refs = refs[1:1 + 4 * n_layers]                 # (wb, bias, ph, pw) per layer
        out_ref = refs[1 + 4 * n_layers]                  # packed lane-dense output slab
        taps_refs = refs[2 + 4 * n_layers:]               # one im2col VMEM scratch per layer

        cur = x_ref                                       # ref for layer 0, value afterwards
        save_slot = 0
        for li, (H, W, Cin, Cout) in enumerate(layer_dims):
            wb_ref, b_ref, ph_ref, pw_ref = p_refs[4 * li:4 * li + 4]
            taps = taps_refs[li]
            K1 = W * Cin
            R = tb * (H + 2) - 2                          # conv matmul M dim (whole block)

            # im2col: 3 ky row-shifted views -> 3 lane bands of a persistent scratch, so
            # the MXU operand below is ONE aligned load (no concatenate temp).
            taps[:, 0 * K1:1 * K1] = cur[0:R, :].astype(mm_dtype)
            taps[:, 1 * K1:2 * K1] = cur[1:R + 1, :].astype(mm_dtype)
            taps[:, 2 * K1:3 * K1] = cur[2:R + 2, :].astype(mm_dtype)

            # 3x3 conv for the whole batch block as ONE MXU matmul (kx shifts + W zero
            # padding folded into the block-banded WB); f32 accumulate, f32 epilogue.
            conv = jnp.dot(taps[...], wb_ref[...], preferred_element_type=jnp.float32)
            act = jnp.maximum(conv + b_ref[...], 0.0)     # (R, W*Cout) f32

            # 2x2 mean pool + per-image valid-row selection + zero re-padding for the
            # next layer, folded into block-structured PH (0.25) and PW (0/1 select).
            pooled = jnp.dot(ph_ref[...], act.astype(mm_dtype),
                             preferred_element_type=jnp.float32)   # (tb*(H//2+2), W*Cout)
            pooled = jnp.dot(pooled.astype(mm_dtype), pw_ref[...],
                             preferred_element_type=jnp.float32)   # (tb*(H//2+2), (W//2)*Cout)

            if li >= n_layers - n_saved:                  # saved feature map -> its lane band
                off = saved_lane_offs[save_slot]
                out_ref[0:pooled.shape[0], off:off + pooled.shape[1]] = pooled
                save_slot += 1
            cur = pooled                                  # stays in VMEM / vregs

    return kernel


# ----------------------------------------------------------------------------
# Host-side packing of conv weights / pool matrices into the fused-lane layout
# ----------------------------------------------------------------------------
def _pack_wb(w, W, Cin, Cout, dtype):
    """WB[(ky*W+wi)*Cin+ci, wo*Cout+co] = w[ky, wi-wo+1, ci, co]; zero if |wi-wo|>1."""
    rows = jnp.arange(3 * W * Cin)
    ky = rows // (W * Cin)
    wi = (rows % (W * Cin)) // Cin
    ci = rows % Cin
    cols = jnp.arange(W * Cout)
    wo = cols // Cout
    co = cols % Cout
    kx = wi[:, None] - wo[None, :] + 1
    valid = (kx >= 0) & (kx <= 2)
    wb = jnp.where(valid,
                   w[ky[:, None], jnp.clip(kx, 0, 2), ci[:, None], co[None, :]],
                   0.0)
    return wb.astype(dtype)


def _pack_ph(H, tb, dtype):
    """Block-structured row-pool: (tb*(H//2+2), tb*(H+2)-2).

    Output row b*(Ho+2)+p: p==0 / p==Ho+1 are all-zero pad rows for the next layer;
    otherwise it pools conv rows b*(H+2)+2*(p-1) and +1 with weight 0.25 each, selecting
    ONLY image b's valid rows (adjacent images' boundary/garbage rows never mix in).
    """
    Ho, Hp = H // 2, H + 2
    R = tb * Hp - 2
    Mn = tb * (Ho + 2)
    ro = jnp.arange(Mn)
    b, p = ro // (Ho + 2), ro % (Ho + 2)
    valid = (p >= 1) & (p <= Ho)
    r0 = b * Hp + 2 * (p - 1)
    r = jnp.arange(R)
    hit = valid[:, None] & ((r[None, :] == r0[:, None]) | (r[None, :] == r0[:, None] + 1))
    return jnp.where(hit, 0.25, 0.0).astype(dtype)


def _pack_pw(W, Cout, dtype):
    """(W*Cout, (W//2)*Cout) 0/1 per-channel column-pool selector."""
    Wo = W // 2
    rr = jnp.arange(W * Cout)
    cc = jnp.arange(Wo * Cout)
    hit = (((rr[:, None] // Cout) // 2) == (cc[None, :] // Cout)) & \
          ((rr[:, None] % Cout) == (cc[None, :] % Cout))
    return jnp.where(hit, 1.0, 0.0).astype(dtype)


def pack_hierarchy(params, n_pre, input_size, tb, mm_dtype=jnp.float32):
    """One-time setup: pack every layer, record static dims and the output-slab layout."""
    H, W = input_size
    layer_dims, packed = [], []
    for (w, b) in params:
        Cin, Cout = int(w.shape[2]), int(w.shape[3])
        layer_dims.append((H, W, Cin, Cout))
        packed.append((
            _pack_wb(w, W, Cin, Cout, mm_dtype),
            jnp.tile(b.astype(jnp.float32), (W,)).reshape(1, W * Cout),   # bias stays f32
            _pack_ph(H, tb, mm_dtype),
            _pack_pw(W, Cout, mm_dtype),
        ))
        H, W = H // 2, W // 2
    n_saved = len(params) - (n_pre - 1)

    # Packed output slab: each saved map gets a contiguous lane band (rows = padded
    # per-image rows); total lane width rounded up to a multiple of 128 -> unmasked vst.
    saved_dims = layer_dims[len(layer_dims) - n_saved:]
    lane_offs, off = [], 0
    for (sH, sW, sCin, sCout) in saved_dims:
        lane_offs.append(off)
        off += (sW // 2) * sCout
    slab_lanes = max(128, _cdiv(off, 128) * 128)
    slab_rows = tb * (saved_dims[0][0] // 2 + 2)           # first saved map is the tallest

    return dict(packed=packed, layer_dims=layer_dims, n_saved=n_saved, tb=tb,
                mm_dtype=mm_dtype, saved_dims=saved_dims, lane_offs=tuple(lane_offs),
                slab_rows=slab_rows, slab_lanes=slab_lanes)


# ----------------------------------------------------------------------------
# Forward pass (matches NDConvHierarchical.forward: returns the saved_vals list)
# ----------------------------------------------------------------------------
def nd_conv_hierarchical_forward(src_nchw, cfg):
    packed, layer_dims, tb = cfg["packed"], cfg["layer_dims"], cfg["tb"]
    n_saved, saved_dims = cfg["n_saved"], cfg["saved_dims"]
    lane_offs, slab_rows, slab_lanes = cfg["lane_offs"], cfg["slab_rows"], cfg["slab_lanes"]
    mm_dtype = cfg["mm_dtype"]

    B = src_nchw.shape[0]
    H0, W0, Cin0, _ = layer_dims[0]
    nb = max(1, _cdiv(B, tb))
    Bp = nb * tb

    # NCHW -> fused-lane (B, H, W*Cin); zero-pad H on the host (no in-kernel pad/zeroing)
    # and stack tb images per grid block along the sublane axis.
    x = jnp.transpose(src_nchw, (0, 2, 3, 1)).reshape(B, H0, W0 * Cin0)
    if Bp > B:
        x = jnp.concatenate([x, jnp.zeros((Bp - B, H0, W0 * Cin0), x.dtype)], axis=0)
    x = jnp.pad(x, ((0, 0), (1, 1), (0, 0)))
    x = x.reshape(nb, tb * (H0 + 2), W0 * Cin0)

    operands = [x]
    in_specs = [pl.BlockSpec((None, tb * (H0 + 2), W0 * Cin0), lambda i: (i, 0, 0))]
    for (wb, bias, ph, pw) in packed:
        # Grid-invariant blocks (index map (0,0)); at this size default double-buffering
        # is harmless.  TODO(synk): pipeline_mode=pl.Buffered(1) here for scaled configs.
        operands += [wb, bias, ph, pw]
        in_specs += [pl.BlockSpec(wb.shape, lambda i: (0, 0)),
                     pl.BlockSpec(bias.shape, lambda i: (0, 0)),
                     pl.BlockSpec(ph.shape, lambda i: (0, 0)),
                     pl.BlockSpec(pw.shape, lambda i: (0, 0))]

    out_shape = jax.ShapeDtypeStruct((nb, slab_rows, slab_lanes), jnp.float32)
    out_spec = pl.BlockSpec((None, slab_rows, slab_lanes), lambda i: (i, 0, 0))

    scratch_shapes = [pltpu.VMEM((tb * (H + 2) - 2, 3 * W * Cin), mm_dtype)
                      for (H, W, Cin, Cout) in layer_dims]

    slab = pl.pallas_call(
        make_hierarchy_kernel(layer_dims, tb, n_saved, lane_offs, mm_dtype),
        out_shape=out_shape,
        grid_spec=pltpu.PrefetchScalarGridSpec(
            num_scalar_prefetch=0,
            grid=(nb,),
            in_specs=in_specs,
            out_specs=out_spec,
            scratch_shapes=scratch_shapes,
        ),
        compiler_params=pltpu.CompilerParams(
            dimension_semantics=("parallel",)),            # both v7x TCs busy when nb >= 2
    )(*operands)

    # Un-pack the lane-dense slab into the saved_vals list (NCHW), stripping per-image
    # pad rows, lane padding and batch padding -- pure layout plumbing.
    saved = []
    for (H, W, Cin, Cout), off in zip(saved_dims, lane_offs):
        Ho, Wo = H // 2, W // 2
        a = slab[:, :tb * (Ho + 2), off:off + Wo * Cout]
        a = a.reshape(nb * tb, Ho + 2, Wo, Cout)[:B, 1:Ho + 1]
        saved.append(jnp.transpose(a, (0, 3, 1, 2)))
    return saved


def choose_tb(batch, target=16):
    """Images per grid step: fill the MXU M dim, but keep >= 2 grid steps (v7x: 2 TCs)."""
    tb = min(target, batch)
    if batch > 1:
        tb = min(tb, _cdiv(batch, 2))
    return max(tb, 1)


# ----------------------------------------------------------------------------
# Parameter construction mirroring NDConvHierarchical.__init__ (2-D path)
# ----------------------------------------------------------------------------
def build_params(input_size, input_channels, d_model, nhead,
                 preprocessing_layers, kernel_size, key):
    channels = d_model // nhead
    size = list(input_size)

    def shrink(sz):
        for j in reversed(range(len(sz))):
            sz[j] = sz[j] // kernel_size
            if sz[j] == 1:
                del sz[j]

    specs = []
    specs.append((input_channels,
                  max(channels // kernel_size ** (preprocessing_layers - 1), input_channels),
                  len(size)))
    shrink(size)
    for i in reversed(range(preprocessing_layers - 1)):
        specs.append((max(channels // kernel_size ** (i + 1), input_channels),
                      max(channels // kernel_size ** i, input_channels),
                      len(size)))
        shrink(size)
    n_pre = len(specs)
    n_conv = int(math.log(max(input_size)) / math.log(kernel_size)) - preprocessing_layers
    for _ in range(n_conv):
        specs.append((channels, channels, len(size)))
        shrink(size)

    params = []
    for (cin, cout, ndims) in specs:
        # TODO(synk): only the 2-D convNd path (activation='relu') is implemented; the
        # torch module collapses to 1-D convs when a spatial dim shrinks to 1.
        assert ndims == 2, "only 2-D hierarchy supported in this kernel"
        key, k1, k2 = jax.random.split(key, 3)
        stdv = 1.0 / math.sqrt(cout * kernel_size ** ndims)
        w = jax.random.uniform(k1, (3, 3, cin, cout), jnp.float32, -stdv, stdv)  # HWIO
        b = jax.random.uniform(k2, (cout,), jnp.float32, -stdv, stdv)
        params.append((w, b))
    return params, n_pre


# pure-JAX reference (XLA conv) for correctness checking
def _ref_forward(src_nchw, params, n_pre):
    x = src_nchw
    outs = []
    for idx, (w, b) in enumerate(params):
        y = jax.lax.conv_general_dilated(
            x, w, window_strides=(1, 1), padding=((1, 1), (1, 1)),
            dimension_numbers=("NCHW", "HWIO", "NCHW"))
        y = jnp.maximum(y + b[None, :, None, None], 0.0)
        B, C, H, W = y.shape
        y = y.reshape(B, C, H // 2, 2, W // 2, 2).mean(axis=(3, 5))
        x = y
        if idx >= n_pre - 1:
            outs.append(y)
    return outs


if __name__ == "__main__":
    # small config consistent with the module's constructor
    input_size = (16, 16)
    input_channels = 4
    d_model = 32
    nhead = 2
    preprocessing_layers = 2
    kernel_size = 2
    batch = 16          # batch-blocked: tb=8 images per grid step -> 2 steps (both v7x TCs)

    key = jax.random.PRNGKey(0)
    key, pkey, xkey = jax.random.split(key, 3)

    params, n_pre = build_params(input_size, input_channels, d_model, nhead,
                                 preprocessing_layers, kernel_size, pkey)

    src = jax.random.normal(xkey, (batch, input_channels) + input_size, jnp.float32)
    tb = choose_tb(batch)

    refs = jax.block_until_ready(_ref_forward(src, params, n_pre))

    # f32 matmul operands: exact-parity path vs the XLA reference.
    cfg32 = pack_hierarchy(params, n_pre, input_size, tb, mm_dtype=jnp.float32)
    fwd32 = jax.jit(functools.partial(nd_conv_hierarchical_forward, cfg=cfg32))
    outs = jax.block_until_ready(fwd32(src))
    assert len(outs) == len(refs)
    for o, r in zip(outs, refs):
        assert o.shape == r.shape and o.dtype == r.dtype
        if not bool(jnp.allclose(o, r, atol=1e-4, rtol=1e-4)):
            raise RuntimeError("Pallas hierarchy output (f32) mismatch vs reference")

    # bf16 matmul operands (v6e/v7x MXU rate, half the weight VMEM); f32 accumulate and
    # f32 bias/ReLU epilogue.  Loose tolerance for the bf16 operand rounding.
    cfg16 = pack_hierarchy(params, n_pre, input_size, tb, mm_dtype=jnp.bfloat16)
    fwd16 = jax.jit(functools.partial(nd_conv_hierarchical_forward, cfg=cfg16))
    outs16 = jax.block_until_ready(fwd16(src))
    for o, r in zip(outs16, refs):
        assert o.shape == r.shape
        if not bool(jnp.allclose(o, r, atol=1e-1, rtol=1e-1)):
            raise RuntimeError("Pallas hierarchy output (bf16) mismatch vs reference")

    print("KERNEL_OK")
</pallas_src>

<mosaic_0001>
module attributes {stable_mosaic.version = 11 : i64} {
  func.func @kernel(%arg0: i32, %arg1: memref<1x144x64xf32, #tpu.memory_space<vmem>>, %arg2: memref<192x128xf32, #tpu.memory_space<vmem>>, %arg3: memref<1x128xf32, #tpu.memory_space<vmem>>, %arg4: memref<80x142xf32, #tpu.memory_space<vmem>>, %arg5: memref<128x64xf32, #tpu.memory_space<vmem>>, %arg6: memref<192x128xf32, #tpu.memory_space<vmem>>, %arg7: memref<1x128xf32, #tpu.memory_space<vmem>>, %arg8: memref<48x78xf32, #tpu.memory_space<vmem>>, %arg9: memref<128x64xf32, #tpu.memory_space<vmem>>, %arg10: memref<192x64xf32, #tpu.memory_space<vmem>>, %arg11: memref<1x64xf32, #tpu.memory_space<vmem>>, %arg12: memref<32x46xf32, #tpu.memory_space<vmem>>, %arg13: memref<64x32xf32, #tpu.memory_space<vmem>>, %arg14: memref<96x32xf32, #tpu.memory_space<vmem>>, %arg15: memref<1x32xf32, #tpu.memory_space<vmem>>, %arg16: memref<24x30xf32, #tpu.memory_space<vmem>>, %arg17: memref<32x16xf32, #tpu.memory_space<vmem>>, %arg18: memref<1x48x128xf32, #tpu.memory_space<vmem>>, %arg19: memref<142x192xf32, #tpu.memory_space<vmem>>, %arg20: memref<78x192xf32, #tpu.memory_space<vmem>>, %arg21: memref<46x192xf32, #tpu.memory_space<vmem>>, %arg22: memref<30x96xf32, #tpu.memory_space<vmem>>) attributes {dimension_semantics = [#tpu.dimension_semantics<parallel>], iteration_bounds = array<i64: 2>, scalar_prefetch = 0 : i64, scratch_operands = 4 : i64, tpu.core_type = #tpu.core_type<tc>, window_params = [{transform_indices = @transform_0, window_bounds = array<i64: 1, 144, 64>}, {pipeline_mode = #tpu.pipeline_mode<synchronous>, transform_indices = @transform_1, window_bounds = array<i64: 192, 128>}, {pipeline_mode = #tpu.pipeline_mode<synchronous>, transform_indices = @transform_2, window_bounds = array<i64: 1, 128>}, {pipeline_mode = #tpu.pipeline_mode<synchronous>, transform_indices = @transform_3, window_bounds = array<i64: 80, 142>}, {pipeline_mode = #tpu.pipeline_mode<synchronous>, transform_indices = @transform_4, window_bounds = array<i64: 128, 64>}, {pipeline_mode = #tpu.pipeline_mode<synchronous>, transform_indices = @transform_5, window_bounds = array<i64: 192, 128>}, {pipeline_mode = #tpu.pipeline_mode<synchronous>, transform_indices = @transform_6, window_bounds = array<i64: 1, 128>}, {pipeline_mode = #tpu.pipeline_mode<synchronous>, transform_indices = @transform_7, window_bounds = array<i64: 48, 78>}, {pipeline_mode = #tpu.pipeline_mode<synchronous>, transform_indices = @transform_8, window_bounds = array<i64: 128, 64>}, {pipeline_mode = #tpu.pipeline_mode<synchronous>, transform_indices = @transform_9, window_bounds = array<i64: 192, 64>}, {pipeline_mode = #tpu.pipeline_mode<synchronous>, transform_indices = @transform_10, window_bounds = array<i64: 1, 64>}, {pipeline_mode = #tpu.pipeline_mode<synchronous>, transform_indices = @transform_11, window_bounds = array<i64: 32, 46>}, {pipeline_mode = #tpu.pipeline_mode<synchronous>, transform_indices = @transform_12, window_bounds = array<i64: 64, 32>}, {pipeline_mode = #tpu.pipeline_mode<synchronous>, transform_indices = @transform_13, window_bounds = array<i64: 96, 32>}, {pipeline_mode = #tpu.pipeline_mode<synchronous>, transform_indices = @transform_14, window_bounds = array<i64: 1, 32>}, {pipeline_mode = #tpu.pipeline_mode<synchronous>, transform_indices = @transform_15, window_bounds = array<i64: 24, 30>}, {pipeline_mode = #tpu.pipeline_mode<synchronous>, transform_indices = @transform_16, window_bounds = array<i64: 32, 16>}, {transform_indices = @transform_17, window_bounds = array<i64: 1, 48, 128>}]} {
    %c0 = arith.constant 0 : index
    %c0_0 = arith.constant 0 : index
    %c0_1 = arith.constant 0 : index
    %0 = vector.load %arg1[%c0, %c0_0, %c0_1] : memref<1x144x64xf32, #tpu.memory_space<vmem>>, vector<1x142x64xf32>
    %1 = vector.shape_cast %0 : vector<1x142x64xf32> to vector<142x64xf32>
    %c0_2 = arith.constant 0 : index
    %c0_3 = arith.constant 0 : index
    %2 = vector.load %arg19[%c0_2, %c0_3] : memref<142x192xf32, #tpu.memory_space<vmem>>, vector<142x64xf32>
    tpu.vector_store %arg19[%c0_2, %c0_3], %1 {strides = array<i32>} : memref<142x192xf32, #tpu.memory_space<vmem>>, vector<142x64xf32>,
    %c0_4 = arith.constant 0 : index
    %c1 = arith.constant 1 : index
    %c0_5 = arith.constant 0 : index
    %3 = vector.load %arg1[%c0_4, %c1, %c0_5] : memref<1x144x64xf32, #tpu.memory_space<vmem>>, vector<1x142x64xf32>
    %4 = vector.shape_cast %3 : vector<1x142x64xf32> to vector<142x64xf32>
    %c0_6 = arith.constant 0 : index
    %c64 = arith.constant 64 : index
    %5 = vector.load %arg19[%c0_6, %c64] : memref<142x192xf32, #tpu.memory_space<vmem>>, vector<142x64xf32>
    tpu.vector_store %arg19[%c0_6, %c64], %4 {strides = array<i32>} : memref<142x192xf32, #tpu.memory_space<vmem>>, vector<142x64xf32>,
    %c0_7 = arith.constant 0 : index
    %c2 = arith.constant 2 : index
    %c0_8 = arith.constant 0 : index
    %6 = vector.load %arg1[%c0_7, %c2, %c0_8] : memref<1x144x64xf32, #tpu.memory_space<vmem>>, vector<1x142x64xf32>
    %7 = vector.shape_cast %6 : vector<1x142x64xf32> to vector<142x64xf32>
    %c0_9 = arith.constant 0 : index
    %c128 = arith.constant 128 : index
    %8 = vector.load %arg19[%c0_9, %c128] : memref<142x192xf32, #tpu.memory_space<vmem>>, vector<142x64xf32>
    tpu.vector_store %arg19[%c0_9, %c128], %7 {strides = array<i32>} : memref<142x192xf32, #tpu.memory_space<vmem>>, vector<142x64xf32>,
    %c0_10 = arith.constant 0 : index
    %c0_11 = arith.constant 0 : index
    %9 = vector.load %arg19[%c0_10, %c0_11] : memref<142x192xf32, #tpu.memory_space<vmem>>, vector<142x192xf32>
    %c0_12 = arith.constant 0 : index
    %c0_13 = arith.constant 0 : index
    %10 = vector.load %arg2[%c0_12, %c0_13] : memref<192x128xf32, #tpu.memory_space<vmem>>, vector<192x128xf32>
    %cst = arith.constant dense<0.000000e+00> : vector<142x128xf32>
    %11 = tpu.matmul %9, %10, %cst {dimension_numbers = #tpu.dot_dimension_numbers<[1], [0], [0], [1], [0, 0, 1, 1], [], []>} : vector<142x192xf32>, vector<192x128xf32>, vector<142x128xf32> -> vector<142x128xf32>
    %c0_14 = arith.constant 0 : index
    %c0_15 = arith.constant 0 : index
    %12 = vector.load %arg3[%c0_14, %c0_15] : memref<1x128xf32, #tpu.memory_space<vmem>>, vector<1x128xf32>
    %13 = vector.broadcast %12 : vector<1x128xf32> to vector<142x128xf32>
    %14 = arith.addf %11, %13 : vector<142x128xf32>
    %cst_16 = arith.constant 0.000000e+00 : f32
    %15 = vector.broadcast %cst_16 : f32 to vector<142x128xf32>
    %16 = arith.maximumf %14, %15 : vector<142x128xf32>
    %c0_17 = arith.constant 0 : index
    %c0_18 = arith.constant 0 : index
    %17 = vector.load %arg4[%c0_17, %c0_18] : memref<80x142xf32, #tpu.memory_space<vmem>>, vector<80x142xf32>
    %cst_19 = arith.constant dense<0.000000e+00> : vector<80x128xf32>
    %18 = tpu.matmul %17, %16, %cst_19 {dimension_numbers = #tpu.dot_dimension_numbers<[1], [0], [0], [1], [0, 0, 1, 1], [], []>} : vector<80x142xf32>, vector<142x128xf32>, vector<80x128xf32> -> vector<80x128xf32>
    %c0_20 = arith.constant 0 : index
    %c0_21 = arith.constant 0 : index
    %19 = vector.load %arg5[%c0_20, %c0_21] : memref<128x64xf32, #tpu.memory_space<vmem>>, vector<128x64xf32>
    %cst_22 = arith.constant dense<0.000000e+00> : vector<80x64xf32>
    %20 = tpu.matmul %18, %19, %cst_22 {dimension_numbers = #tpu.dot_dimension_numbers<[1], [0], [0], [1], [0, 0, 1, 1], [], []>} : vector<80x128xf32>, vector<128x64xf32>, vector<80x64xf32> -> vector<80x64xf32>
    %21 = vector.extract_strided_slice %20 {offsets = [0, 0], sizes = [78, 64], strides = [1, 1]} : vector<80x64xf32> to vector<78x64xf32>
    %c0_23 = arith.constant 0 : index
    %c0_24 = arith.constant 0 : index
    %22 = vector.load %arg20[%c0_23, %c0_24] : memref<78x192xf32, #tpu.memory_space<vmem>>, vector<78x64xf32>
    tpu.vector_store %arg20[%c0_23, %c0_24], %21 {strides = array<i32>} : memref<78x192xf32, #tpu.memory_space<vmem>>, vector<78x64xf32>,
    %23 = vector.extract_strided_slice %20 {offsets = [1, 0], sizes = [78, 64], strides = [1, 1]} : vector<80x64xf32> to vector<78x64xf32>
    %c0_25 = arith.constant 0 : index
    %c64_26 = arith.constant 64 : index
    %24 = vector.load %arg20[%c0_25, %c64_26] : memref<78x192xf32, #tpu.memory_space<vmem>>, vector<78x64xf32>
    tpu.vector_store %arg20[%c0_25, %c64_26], %23 {strides = array<i32>} : memref<78x192xf32, #tpu.memory_space<vmem>>, vector<78x64xf32>,
    %25 = vector.extract_strided_slice %20 {offsets = [2, 0], sizes = [78, 64], strides = [1, 1]} : vector<80x64xf32> to vector<78x64xf32>
    %c0_27 = arith.constant 0 : index
    %c128_28 = arith.constant 128 : index
    %26 = vector.load %arg20[%c0_27, %c128_28] : memref<78x192xf32, #tpu.memory_space<vmem>>, vector<78x64xf32>
    tpu.vector_store %arg20[%c0_27, %c128_28], %25 {strides = array<i32>} : memref<78x192xf32, #tpu.memory_space<vmem>>, vector<78x64xf32>,
    %c0_29 = arith.constant 0 : index
    %c0_30 = arith.constant 0 : index
    %27 = vector.load %arg20[%c0_29, %c0_30] : memref<78x192xf32, #tpu.memory_space<vmem>>, vector<78x192xf32>
    %c0_31 = arith.constant 0 : index
    %c0_32 = arith.constant 0 : index
    %28 = vector.load %arg6[%c0_31, %c0_32] : memref<192x128xf32, #tpu.memory_space<vmem>>, vector<192x128xf32>
    %cst_33 = arith.constant dense<0.000000e+00> : vector<78x128xf32>
    %29 = tpu.matmul %27, %28, %cst_33 {dimension_numbers = #tpu.dot_dimension_numbers<[1], [0], [0], [1], [0, 0, 1, 1], [], []>} : vector<78x192xf32>, vector<192x128xf32>, vector<78x128xf32> -> vector<78x128xf32>
    %c0_34 = arith.constant 0 : index
    %c0_35 = arith.constant 0 : index
    %30 = vector.load %arg7[%c0_34, %c0_35] : memref<1x128xf32, #tpu.memory_space<vmem>>, vector<1x128xf32>
    %31 = vector.broadcast %30 : vector<1x128xf32> to vector<78x128xf32>
    %32 = arith.addf %29, %31 : vector<78x128xf32>
    %cst_36 = arith.constant 0.000000e+00 : f32
    %33 = vector.broadcast %cst_36 : f32 to vector<78x128xf32>
    %34 = arith.maximumf %32, %33 : vector<78x128xf32>
    %c0_37 = arith.constant 0 : index
    %c0_38 = arith.constant 0 : index
    %35 = vector.load %arg8[%c0_37, %c0_38] : memref<48x78xf32, #tpu.memory_space<vmem>>, vector<48x78xf32>
    %cst_39 = arith.constant dense<0.000000e+00> : vector<48x128xf32>
    %36 = tpu.matmul %35, %34, %cst_39 {dimension_numbers = #tpu.dot_dimension_numbers<[1], [0], [0], [1], [0, 0, 1, 1], [], []>} : vector<48x78xf32>, vector<78x128xf32>, vector<48x128xf32> -> vector<48x128xf32>
    %c0_40 = arith.constant 0 : index
    %c0_41 = arith.constant 0 : index
    %37 = vector.load %arg9[%c0_40, %c0_41] : memref<128x64xf32, #tpu.memory_space<vmem>>, vector<128x64xf32>
    %cst_42 = arith.constant dense<0.000000e+00> : vector<48x64xf32>
    %38 = tpu.matmul %36, %37, %cst_42 {dimension_numbers = #tpu.dot_dimension_numbers<[1], [0], [0], [1], [0, 0, 1, 1], [], []>} : vector<48x128xf32>, vector<128x64xf32>, vector<48x64xf32> -> vector<48x64xf32>
    %c0_43 = arith.constant 0 : index
    %c0_44 = arith.constant 0 : index
    %c0_45 = arith.constant 0 : index
    %39 = vector.load %arg18[%c0_43, %c0_44, %c0_45] : memref<1x48x128xf32, #tpu.memory_space<vmem>>, vector<1x48x64xf32>
    %40 = vector.shape_cast %39 : vector<1x48x64xf32> to vector<48x64xf32>
    %41 = vector.shape_cast %38 : vector<48x64xf32> to vector<1x48x64xf32>
    tpu.vector_store %arg18[%c0_43, %c0_44, %c0_45], %41 {strides = array<i32>} : memref<1x48x128xf32, #tpu.memory_space<vmem>>, vector<1x48x64xf32>,
    %42 = vector.extract_strided_slice %38 {offsets = [0, 0], sizes = [46, 64], strides = [1, 1]} : vector<48x64xf32> to vector<46x64xf32>
    %c0_46 = arith.constant 0 : index
    %c0_47 = arith.constant 0 : index
    %43 = vector.load %arg21[%c0_46, %c0_47] : memref<46x192xf32, #tpu.memory_space<vmem>>, vector<46x64xf32>
    tpu.vector_store %arg21[%c0_46, %c0_47], %42 {strides = array<i32>} : memref<46x192xf32, #tpu.memory_space<vmem>>, vector<46x64xf32>,
    %44 = vector.extract_strided_slice %38 {offsets = [1, 0], sizes = [46, 64], strides = [1, 1]} : vector<48x64xf32> to vector<46x64xf32>
    %c0_48 = arith.constant 0 : index
    %c64_49 = arith.constant 64 : index
    %45 = vector.load %arg21[%c0_48, %c64_49] : memref<46x192xf32, #tpu.memory_space<vmem>>, vector<46x64xf32>
    tpu.vector_store %arg21[%c0_48, %c64_49], %44 {strides = array<i32>} : memref<46x192xf32, #tpu.memory_space<vmem>>, vector<46x64xf32>,
    %46 = vector.extract_strided_slice %38 {offsets = [2, 0], sizes = [46, 64], strides = [1, 1]} : vector<48x64xf32> to vector<46x64xf32>
    %c0_50 = arith.constant 0 : index
    %c128_51 = arith.constant 128 : index
    %47 = vector.load %arg21[%c0_50, %c128_51] : memref<46x192xf32, #tpu.memory_space<vmem>>, vector<46x64xf32>
    tpu.vector_store %arg21[%c0_50, %c128_51], %46 {strides = array<i32>} : memref<46x192xf32, #tpu.memory_space<vmem>>, vector<46x64xf32>,
    %c0_52 = arith.constant 0 : index
    %c0_53 = arith.constant 0 : index
    %48 = vector.load %arg21[%c0_52, %c0_53] : memref<46x192xf32, #tpu.memory_space<vmem>>, vector<46x192xf32>
    %c0_54 = arith.constant 0 : index
    %c0_55 = arith.constant 0 : index
    %49 = vector.load %arg10[%c0_54, %c0_55] : memref<192x64xf32, #tpu.memory_space<vmem>>, vector<192x64xf32>
    %cst_56 = arith.constant dense<0.000000e+00> : vector<46x64xf32>
    %50 = tpu.matmul %48, %49, %cst_56 {dimension_numbers = #tpu.dot_dimension_numbers<[1], [0], [0], [1], [0, 0, 1, 1], [], []>} : vector<46x192xf32>, vector<192x64xf32>, vector<46x64xf32> -> vector<46x64xf32>
    %c0_57 = arith.constant 0 : index
    %c0_58 = arith.constant 0 : index
    %51 = vector.load %arg11[%c0_57, %c0_58] : memref<1x64xf32, #tpu.memory_space<vmem>>, vector<1x64xf32>
    %52 = vector.broadcast %51 : vector<1x64xf32> to vector<46x64xf32>
    %53 = arith.addf %50, %52 : vector<46x64xf32>
    %cst_59 = arith.constant 0.000000e+00 : f32
    %54 = vector.broadcast %cst_59 : f32 to vector<46x64xf32>
    %55 = arith.maximumf %53, %54 : vector<46x64xf32>
    %c0_60 = arith.constant 0 : index
    %c0_61 = arith.constant 0 : index
    %56 = vector.load %arg12[%c0_60, %c0_61] : memref<32x46xf32, #tpu.memory_space<vmem>>, vector<32x46xf32>
    %cst_62 = arith.constant dense<0.000000e+00> : vector<32x64xf32>
    %57 = tpu.matmul %56, %55, %cst_62 {dimension_numbers = #tpu.dot_dimension_numbers<[1], [0], [0], [1], [0, 0, 1, 1], [], []>} : vector<32x46xf32>, vector<46x64xf32>, vector<32x64xf32> -> vector<32x64xf32>
    %c0_63 = arith.constant 0 : index
    %c0_64 = arith.constant 0 : index
    %58 = vector.load %arg13[%c0_63, %c0_64] : memref<64x32xf32, #tpu.memory_space<vmem>>, vector<64x32xf32>
    %cst_65 = arith.constant dense<0.000000e+00> : vector<32x32xf32>
    %59 = tpu.matmul %57, %58, %cst_65 {dimension_numbers = #tpu.dot_dimension_numbers<[1], [0], [0], [1], [0, 0, 1, 1], [], []>} : vector<32x64xf32>, vector<64x32xf32>, vector<32x32xf32> -> vector<32x32xf32>
    %c0_66 = arith.constant 0 : index
    %c0_67 = arith.constant 0 : index
    %c64_68 = arith.constant 64 : index
    %60 = vector.load %arg18[%c0_66, %c0_67, %c64_68] : memref<1x48x128xf32, #tpu.memory_space<vmem>>, vector<1x32x32xf32>
    %61 = vector.shape_cast %60 : vector<1x32x32xf32> to vector<32x32xf32>
    %62 = vector.shape_cast %59 : vector<32x32xf32> to vector<1x32x32xf32>
    tpu.vector_store %arg18[%c0_66, %c0_67, %c64_68], %62 {strides = array<i32>} : memref<1x48x128xf32, #tpu.memory_space<vmem>>, vector<1x32x32xf32>,
    %63 = vector.extract_strided_slice %59 {offsets = [0, 0], sizes = [30, 32], strides = [1, 1]} : vector<32x32xf32> to vector<30x32xf32>
    %c0_69 = arith.constant 0 : index
    %c0_70 = arith.constant 0 : index
    %64 = vector.load %arg22[%c0_69, %c0_70] : memref<30x96xf32, #tpu.memory_space<vmem>>, vector<30x32xf32>
    tpu.vector_store %arg22[%c0_69, %c0_70], %63 {strides = array<i32>} : memref<30x96xf32, #tpu.memory_space<vmem>>, vector<30x32xf32>,
    %65 = vector.extract_strided_slice %59 {offsets = [1, 0], sizes = [30, 32], strides = [1, 1]} : vector<32x32xf32> to vector<30x32xf32>
    %c0_71 = arith.constant 0 : index
    %c32 = arith.constant 32 : index
    %66 = vector.load %arg22[%c0_71, %c32] : memref<30x96xf32, #tpu.memory_space<vmem>>, vector<30x32xf32>
    tpu.vector_store %arg22[%c0_71, %c32], %65 {strides = array<i32>} : memref<30x96xf32, #tpu.memory_space<vmem>>, vector<30x32xf32>,
    %67 = vector.extract_strided_slice %59 {offsets = [2, 0], sizes = [30, 32], strides = [1, 1]} : vector<32x32xf32> to vector<30x32xf32>
    %c0_72 = arith.constant 0 : index
    %c64_73 = arith.constant 64 : index
    %68 = vector.load %arg22[%c0_72, %c64_73] : memref<30x96xf32, #tpu.memory_space<vmem>>, vector<30x32xf32>
    tpu.vector_store %arg22[%c0_72, %c64_73], %67 {strides = array<i32>} : memref<30x96xf32, #tpu.memory_space<vmem>>, vector<30x32xf32>,
    %c0_74 = arith.constant 0 : index
    %c0_75 = arith.constant 0 : index
    %69 = vector.load %arg22[%c0_74, %c0_75] : memref<30x96xf32, #tpu.memory_space<vmem>>, vector<30x96xf32>
    %c0_76 = arith.constant 0 : index
    %c0_77 = arith.constant 0 : index
    %70 = vector.load %arg14[%c0_76, %c0_77] : memref<96x32xf32, #tpu.memory_space<vmem>>, vector<96x32xf32>
    %cst_78 = arith.constant dense<0.000000e+00> : vector<30x32xf32>
    %71 = tpu.matmul %69, %70, %cst_78 {dimension_numbers = #tpu.dot_dimension_numbers<[1], [0], [0], [1], [0, 0, 1, 1], [], []>} : vector<30x96xf32>, vector<96x32xf32>, vector<30x32xf32> -> vector<30x32xf32>
    %c0_79 = arith.constant 0 : index
    %c0_80 = arith.constant 0 : index
    %72 = vector.load %arg15[%c0_79, %c0_80] : memref<1x32xf32, #tpu.memory_space<vmem>>, vector<1x32xf32>
    %73 = vector.broadcast %72 : vector<1x32xf32> to vector<30x32xf32>
    %74 = arith.addf %71, %73 : vector<30x32xf32>
    %cst_81 = arith.constant 0.000000e+00 : f32
    %75 = vector.broadcast %cst_81 : f32 to vector<30x32xf32>
    %76 = arith.maximumf %74, %75 : vector<30x32xf32>
    %c0_82 = arith.constant 0 : index
    %c0_83 = arith.constant 0 : index
    %77 = vector.load %arg16[%c0_82, %c0_83] : memref<24x30xf32, #tpu.memory_space<vmem>>, vector<24x30xf32>
    %cst_84 = arith.constant dense<0.000000e+00> : vector<24x32xf32>
    %78 = tpu.matmul %77, %76, %cst_84 {dimension_numbers = #tpu.dot_dimension_numbers<[1], [0], [0], [1], [0, 0, 1, 1], [], []>} : vector<24x30xf32>, vector<30x32xf32>, vector<24x32xf32> -> vector<24x32xf32>
    %c0_85 = arith.constant 0 : index
    %c0_86 = arith.constant 0 : index
    %79 = vector.load %arg17[%c0_85, %c0_86] : memref<32x16xf32, #tpu.memory_space<vmem>>, vector<32x16xf32>
    %cst_87 = arith.constant dense<0.000000e+00> : vector<24x16xf32>
    %80 = tpu.matmul %78, %79, %cst_87 {dimension_numbers = #tpu.dot_dimension_numbers<[1], [0], [0], [1], [0, 0, 1, 1], [], []>} : vector<24x32xf32>, vector<32x16xf32>, vector<24x16xf32> -> vector<24x16xf32>
    %c0_88 = arith.constant 0 : index
    %c0_89 = arith.constant 0 : index
    %c96 = arith.constant 96 : index
    %81 = vector.load %arg18[%c0_88, %c0_89, %c96] : memref<1x48x128xf32, #tpu.memory_space<vmem>>, vector<1x24x16xf32>
    %82 = vector.shape_cast %81 : vector<1x24x16xf32> to vector<24x16xf32>
    %83 = vector.shape_cast %80 : vector<24x16xf32> to vector<1x24x16xf32>
    tpu.vector_store %arg18[%c0_88, %c0_89, %c96], %83 {strides = array<i32>} : memref<1x48x128xf32, #tpu.memory_space<vmem>>, vector<1x24x16xf32>,
    return
  }
  func.func @transform_0(%arg0: i32) -> (i32, i32, i32) {
    %c0_i32 = arith.constant 0 : i32
    %c0_i32_0 = arith.constant 0 : i32
    %c0_i32_1 = arith.constant 0 : i32
    return %arg0, %c0_i32, %c0_i32_0 : i32, i32, i32
  }
  func.func @transform_1(%arg0: i32) -> (i32, i32) {
    %c0_i32 = arith.constant 0 : i32
    %c0_i32_0 = arith.constant 0 : i32
    %c0_i32_1 = arith.constant 0 : i32
    return %c0_i32, %c0_i32_0 : i32, i32
  }
  func.func @transform_2(%arg0: i32) -> (i32, i32) {
    %c0_i32 = arith.constant 0 : i32
    %c0_i32_0 = arith.constant 0 : i32
    %c0_i32_1 = arith.constant 0 : i32
    return %c0_i32, %c0_i32_0 : i32, i32
  }
  func.func @transform_3(%arg0: i32) -> (i32, i32) {
    %c0_i32 = arith.constant 0 : i32
    %c0_i32_0 = arith.constant 0 : i32
    %c0_i32_1 = arith.constant 0 : i32
    return %c0_i32, %c0_i32_0 : i32, i32
  }
  func.func @transform_4(%arg0: i32) -> (i32, i32) {
    %c0_i32 = arith.constant 0 : i32
    %c0_i32_0 = arith.constant 0 : i32
    %c0_i32_1 = arith.constant 0 : i32
    return %c0_i32, %c0_i32_0 : i32, i32
  }
  func.func @transform_5(%arg0: i32) -> (i32, i32) {
    %c0_i32 = arith.constant 0 : i32
    %c0_i32_0 = arith.constant 0 : i32
    %c0_i32_1 = arith.constant 0 : i32
    return %c0_i32, %c0_i32_0 : i32, i32
  }
  func.func @transform_6(%arg0: i32) -> (i32, i32) {
    %c0_i32 = arith.constant 0 : i32
    %c0_i32_0 = arith.constant 0 : i32
    %c0_i32_1 = arith.constant 0 : i32
    return %c0_i32, %c0_i32_0 : i32, i32
  }
  func.func @transform_7(%arg0: i32) -> (i32, i32) {
    %c0_i32 = arith.constant 0 : i32
    %c0_i32_0 = arith.constant 0 : i32
    %c0_i32_1 = arith.constant 0 : i32
    return %c0_i32, %c0_i32_0 : i32, i32
  }
  func.func @transform_8(%arg0: i32) -> (i32, i32) {
    %c0_i32 = arith.constant 0 : i32
    %c0_i32_0 = arith.constant 0 : i32
    %c0_i32_1 = arith.constant 0 : i32
    return %c0_i32, %c0_i32_0 : i32, i32
  }
  func.func @transform_9(%arg0: i32) -> (i32, i32) {
    %c0_i32 = arith.constant 0 : i32
    %c0_i32_0 = arith.constant 0 : i32
    %c0_i32_1 = arith.constant 0 : i32
    return %c0_i32, %c0_i32_0 : i32, i32
  }
  func.func @transform_10(%arg0: i32) -> (i32, i32) {
    %c0_i32 = arith.constant 0 : i32
    %c0_i32_0 = arith.constant 0 : i32
    %c0_i32_1 = arith.constant 0 : i32
    return %c0_i32, %c0_i32_0 : i32, i32
  }
  func.func @transform_11(%arg0: i32) -> (i32, i32) {
    %c0_i32 = arith.constant 0 : i32
    %c0_i32_0 = arith.constant 0 : i32
    %c0_i32_1 = arith.constant 0 : i32
    return %c0_i32, %c0_i32_0 : i32, i32
  }
  func.func @transform_12(%arg0: i32) -> (i32, i32) {
    %c0_i32 = arith.constant 0 : i32
    %c0_i32_0 = arith.constant 0 : i32
    %c0_i32_1 = arith.constant 0 : i32
    return %c0_i32, %c0_i32_0 : i32, i32
  }
  func.func @transform_13(%arg0: i32) -> (i32, i32) {
    %c0_i32 = arith.constant 0 : i32
    %c0_i32_0 = arith.constant 0 : i32
    %c0_i32_1 = arith.constant 0 : i32
    return %c0_i32, %c0_i32_0 : i32, i32
  }
  func.func @transform_14(%arg0: i32) -> (i32, i32) {
    %c0_i32 = arith.constant 0 : i32
    %c0_i32_0 = arith.constant 0 : i32
    %c0_i32_1 = arith.constant 0 : i32
    return %c0_i32, %c0_i32_0 : i32, i32
  }
  func.func @transform_15(%arg0: i32) -> (i32, i32) {
    %c0_i32 = arith.constant 0 : i32
    %c0_i32_0 = arith.constant 0 : i32
    %c0_i32_1 = arith.constant 0 : i32
    return %c0_i32, %c0_i32_0 : i32, i32
  }
  func.func @transform_16(%arg0: i32) -> (i32, i32) {
    %c0_i32 = arith.constant 0 : i32
    %c0_i32_0 = arith.constant 0 : i32
    %c0_i32_1 = arith.constant 0 : i32
    return %c0_i32, %c0_i32_0 : i32, i32
  }
  func.func @transform_17(%arg0: i32) -> (i32, i32, i32) {
    %c0_i32 = arith.constant 0 : i32
    %c0_i32_0 = arith.constant 0 : i32
    %c0_i32_1 = arith.constant 0 : i32
    return %arg0, %c0_i32, %c0_i32_0 : i32, i32, i32
  }
}

</mosaic_0001>

<bundles_post_ra>
// kernel: nd_conv_hierarchical_forward.1
= control target key start
LH: loop header
LB: loop body
LE: loop exit
PB: predicated region body
PF: predicated region fallthrough
CT: control target
= control target key end

     0   :  { %s3311_s24 = smov 0   ;;  %s4296_s0 = inlined_call_operand.vmem [shape: f32[2,144,64], index: 0, kind: input, shape index: {}]   ;;  %s4297_s1 = inlined_call_operand.vmem [shape: f32[192,128], index: 1, kind: input, shape index: {}]   ;;  %s4298_s2 = inlined_call_operand.vmem [shape: f32[1,128], index: 2, kind: input, shape index: {}]   ;;  %s4299_s3 = inlined_call_operand.vmem [shape: f32[80,142], index: 3, kind: input, shape index: {}]   ;;  %s4300_s4 = inlined_call_operand.vmem [shape: f32[128,64], index: 4, kind: input, shape index: {}]   ;;  %s4301_s5 = inlined_call_operand.vmem [shape: f32[192,128], index: 5, kind: input, shape index: {}]   ;;  %s4302_s6 = inlined_call_operand.vmem [shape: f32[1,128], index: 6, kind: input, shape index: {}]   ;;  %s4303_s7 = inlined_call_operand.vmem [shape: f32[48,78], index: 7, kind: input, shape index: {}]   ;;  %s4304_s8 = inlined_call_operand.vmem [shape: f32[128,64], index: 8, kind: input, shape index: {}]   ;;  %s4305_s9 = inlined_call_operand.vmem [shape: f32[192,64], index: 9, kind: input, shape index: {}]   ;;  %s4306_s10 = inlined_call_operand.vmem [shape: f32[1,64], index: 10, kind: input, shape index: {}]   ;;  %s4307_s11 = inlined_call_operand.vmem [shape: f32[32,46], index: 11, kind: input, shape index: {}]   ;;  %s4308_s12 = inlined_call_operand.vmem [shape: f32[64,32], index: 12, kind: input, shape index: {}]   ;;  %s4309_s13 = inlined_call_operand.vmem [shape: f32[96,32], index: 13, kind: input, shape index: {}]   ;;  %s4310_s14 = inlined_call_operand.vmem [shape: f32[1,32], index: 14, kind: input, shape index: {}]   ;;  %s4311_s15 = inlined_call_operand.vmem [shape: f32[24,30], index: 15, kind: input, shape index: {}]   ;;  %s4312_s16 = inlined_call_operand.vmem [shape: f32[32,16], index: 16, kind: input, shape index: {}]   ;;  %s4313_s17 = inlined_call_operand.vmem [shape: f32[2,48,128], index: 17, kind: output, shape index: {}]  }
   0x1   :  { %4315 = sst [smem:[#allocation6_spill]] %s4296_s0 }
   0x2   :  { %4316 = sst [smem:[#allocation7_spill]] %s4297_s1 }
   0x3 LB: > { %s2771_s25 = sadd.s32 4294967295, %s3214_s24   ;;  %p2775_p0 = scmp.ge.s32.totalorder %s3214_s24, 1  ;;  %s3214_s24 = sphi %s3311_s24, %s27_s24  }
   0x4   : > { %p487_p1 = scmp.lt.s32.totalorder %s3214_s24, 3 }
   0x6   : > { %p488_p2 = pnand %p2775_p0, %p487_p1 }
   0x7   : > { %p539_p3 = scmp.lt.s32.totalorder (!%p488_p2), %s2771_s25, 1  ;;  %s4317_s28 = sld [smem:[#allocation7_spill]] (!%p488_p2) }
   0x8   : > { %491 = sbr.rel (%p488_p2) target bundleno = 3198 (0xc7e), region = 88  ;;  %s4318_s21 = sld [smem:[#allocation6_spill]] (!%p488_p2) }
   0x9   : > { %s3217_s27 = smov (!%p488_p2), 64   ;;  %s3218_s29 = smov (!%p488_p2), 32  }
   0xa   : > { %s3220_s26 = smov (!%p488_p2), 96  }
   0xd   : > { %v784_v0 = vld [vmem:[%s4317_s28 + $0x78] sm:$0xff]  ;;  %v3216_v1 = vmov 0.0   ;;  %v783_v2 = vld [vmem:[%s4317_s28 + $0x70] sm:$0xff]  ;;  %s4320_s25 = smov (!%p539_p3, %s2771_s25), 1  ;;  %v782_v3 = vld [vmem:[%s4317_s28 + $0x68] sm:$0xff]  ;;  %vm567_vm0 = vcmask 523264  }
   0xe   : > { %854 = vmatprep.subr.mxu0 %v3216_v1  ;;  %1082 = vmatprep.subr.mxu1 %v3216_v1  ;;  %s3193_s19 = smul.u32 144, %s4320_s25  ;;  %v781_v4 = vld [vmem:[%s4317_s28 + $0x60] sm:$0xff]  ;;  %v780_v7 = vld [vmem:[%s4317_s28 + $0x58] sm:$0xff]  ;;  %v779_v10 = vld [vmem:[%s4317_s28 + $0x50] sm:$0xff]  ;;  %vm585_vm1 = vcmask 521216   ;;  %vm677_vm2 = vcmask 1048064  }
   0xf   : > { %855 = vmatpush1.msra.mxu0 %v784_v0  ;;  %v778_v14 = vld [vmem:[%s4317_s28 + $0x48] sm:$0xff]  ;;  %v777_v15 = vld [vmem:[%s4317_s28 + $0x40] sm:$0xff]  ;;  %v776_v23 = vld [vmem:[%s4317_s28 + $0x38] sm:$0xff]  ;;  %vm695_vm3 = vcmask 1046016   ;;  %vm1047_vm4 = vcmask 113664   ;;  %vm1078_vm5 = vcmask 1045504  }
  0x10   : > { %856 = vmatprep.subr.mxu0 %v3216_v1  ;;  %s3338_s22 = scalar_lea.vmem %s4318_s21, %s3193_s19  ;;  %v775_v36 = vld [vmem:[%s4317_s28 + $0x30] sm:$0xff]  ;;  %v774_v39 = vld [vmem:[%s4317_s28 + $0x28] sm:$0xff]  ;;  %v773_v43 = vld [vmem:[%s4317_s28 + $0x20] sm:$0xff]  ;;  %vm1348_vm6 = vcmask 1046528   ;;  %vm1659_vm7 = vcmask 637952   ;;  %s3194_s30 = smul.u32 48, %s4320_s25 }
  0x11   : > { %857 = vmatpush1.msra.mxu0 %v783_v2  ;;  %v587_v5 = vld [vmem:[%s3338_s22 + $0x1] sm:$0xff]  ;;  %v589_v6 = vld [vmem:[%s3338_s22 + $0x11] sm:$0xff]  ;;  %v588_v8 = vld [vmem:[%s3338_s22 + $0x9] sm:$0xff]  ;;  %vm2129_vm8 = vcmask 375808   ;;  %vm2356_vm9 = vcmask 261120   ;;  %vm2360_vm10 = vcmask 259072  }
  0x12   : > { %858 = vmatprep.subr.mxu0 %v3216_v1  ;;  %623 = vrot.lane.b32.xlu0 %v587_v5, %s3217_s27  ;;  %v590_v9 = vld [vmem:[%s3338_s22 + $0x19] sm:$0xff]  ;;  %v591_v11 = vld [vmem:[%s3338_s22 + $0x21] sm:$0xff]  ;;  %v592_v12 = vld [vmem:[%s3338_s22 + $0x29] sm:$0xff]  ;;  %s4076_s1 = scalar_lea.vmem %s4313_s17, %s3194_s30  ;;  %vm2376_vm11 = vcmask 523520   ;;  %vm2374_vm12 = vcmask 523521   ;;  %vm2351_vm13 = vcmask 785920  }
  0x13   : > { %859 = vmatpush1.msra.mxu0 %v782_v3  ;;  %627 = vrot.lane.b32.xlu1 %v589_v6, %s3217_s27  ;;  %v549_v13 = vld [vmem:[%s3338_s22] sm:$0xff]  ;;  %v550_v16 = vld [vmem:[%s3338_s22 + $0x8] sm:$0xff]  ;;  %v593_v17 = vld [vmem:[%s3338_s22 + $0x31] sm:$0xff]  ;;  %vm2381_vm14 = vcmask 785922   ;;  %vm2379_vm15 = vcmask 522496  }
  0x14   : > { %860 = vmatprep.subr.mxu0 %v3216_v1  ;;  %568 = vst.msk [vmem:[#allocation2] sm:$0xff] %vm567_vm0, %v549_v13  ;;  %v594_v18 = vld [vmem:[%s3338_s22 + $0x39] sm:$0xff]  ;;  %569 = vst.msk [vmem:[#allocation2 + $0x10] sm:$0xff] %vm567_vm0, %v550_v16  ;;  %v697_v19 = vld [vmem:[%s3338_s22 + $0x2] sm:$0xff] }
  0x15   : > { %861 = vmatpush1.msra.mxu0 %v781_v4  ;;  %v551_v20 = vld [vmem:[%s3338_s22 + $0x10] sm:$0xff]  ;;  %715 = vst.msk [vmem:[#allocation2 + $0x8] sm:$0xff] %vm567_vm0, %v697_v19  ;;  %v552_v21 = vld [vmem:[%s3338_s22 + $0x18] sm:$0xff]  ;;  %v553_v24 = vld [vmem:[%s3338_s22 + $0x20] sm:$0xff] }
  0x16   : > { %862 = vmatprep.subr.mxu0 %v3216_v1  ;;  %625 = vrot.lane.b32.xlu0 %v588_v8, %s3217_s27  ;;  %570 = vst.msk [vmem:[#allocation2 + $0x20] sm:$0xff] %vm567_vm0, %v551_v20  ;;  %v698_v22 = vld [vmem:[%s3338_s22 + $0xa] sm:$0xff]  ;;  %571 = vst.msk [vmem:[#allocation2 + $0x30] sm:$0xff] %vm567_vm0, %v552_v21  ;;  %v699_v25 = vld [vmem:[%s3338_s22 + $0x12] sm:$0xff] }
  0x17   : > { %863 = vmatpush1.msra.mxu0 %v780_v7  ;;  %629 = vrot.lane.b32.xlu1 %v590_v9, %s3217_s27  ;;  %716 = vst.msk [vmem:[#allocation2 + $0x18] sm:$0xff] %vm567_vm0, %v698_v22  ;;  %v554_v26 = vld [vmem:[%s3338_s22 + $0x28] sm:$0xff]  ;;  %572 = vst.msk [vmem:[#allocation2 + $0x40] sm:$0xff] %vm567_vm0, %v553_v24  ;;  %v700_v27 = vld [vmem:[%s3338_s22 + $0x1a] sm:$0xff] }
  0x18   : > { %864 = vmatprep.subr.mxu0 %v3216_v1  ;;  %717 = vst.msk [vmem:[#allocation2 + $0x28] sm:$0xff] %vm567_vm0, %v699_v25  ;;  %573 = vst.msk [vmem:[#allocation2 + $0x50] sm:$0xff] %vm567_vm0, %v554_v26  ;;  %v555_v28 = vld [vmem:[%s3338_s22 + $0x30] sm:$0xff]  ;;  %v701_v29 = vld [vmem:[%s3338_s22 + $0x22] sm:$0xff] }
  0x19   : > { %865 = vmatpush1.msra.mxu0 %v779_v10  ;;  %718 = vst.msk [vmem:[#allocation2 + $0x38] sm:$0xff] %vm567_vm0, %v700_v27  ;;  %574 = vst.msk [vmem:[#allocation2 + $0x60] sm:$0xff] %vm567_vm0, %v555_v28  ;;  %v556_v30 = vld [vmem:[%s3338_s22 + $0x38] sm:$0xff]  ;;  %v702_v31 = vld [vmem:[%s3338_s22 + $0x2a] sm:$0xff] }
  0x1a   : > { %866 = vmatprep.subr.mxu0 %v3216_v1  ;;  %631 = vrot.lane.b32.xlu0 %v591_v11, %s3217_s27  ;;  %719 = vst.msk [vmem:[#allocation2 + $0x48] sm:$0xff] %vm567_vm0, %v701_v29  ;;  %v703_v32 = vld [vmem:[%s3338_s22 + $0x32] sm:$0xff]  ;;  %575 = vst.msk [vmem:[#allocation2 + $0x70] sm:$0xff] %vm567_vm0, %v556_v30  ;;  %v595_v33 = vld [vmem:[%s3338_s22 + $0x41] sm:$0xff] }
  0x1b   : > { %633 = vrot.lane.b32.xlu1 %v592_v12, %s3217_s27  ;;  %867 = vmatpush1.msra.mxu0 %v778_v14  ;;  %720 = vst.msk [vmem:[#allocation2 + $0x58] sm:$0xff] %vm567_vm0, %v702_v31  ;;  %721 = vst.msk [vmem:[#allocation2 + $0x68] sm:$0xff] %vm567_vm0, %v703_v32  ;;  %v596_v34 = vld [vmem:[%s3338_s22 + $0x49] sm:$0xff]  ;;  %v704_v35 = vld [vmem:[%s3338_s22 + $0x3a] sm:$0xff] }
  0x1c   : > { %868 = vmatprep.subr.mxu0 %v3216_v1  ;;  %722 = vst.msk [vmem:[#allocation2 + $0x78] sm:$0xff] %vm567_vm0, %v704_v35  ;;  %v734_v37 = vld [vmem:[#allocation2 + $0x8] sm:$0xff]  ;;  %v557_v38 = vld [vmem:[%s3338_s22 + $0x40] sm:$0xff]  ;;  %v597_v40 = vld [vmem:[%s3338_s22 + $0x51] sm:$0xff] }
  0x1d   : > { %869 = vmatpush1.msra.mxu0 %v777_v15  ;;  %576 = vst.msk [vmem:[#allocation2 + $0x80] sm:$0xff] %vm567_vm0, %v557_v38  ;;  %v598_v41 = vld [vmem:[%s3338_s22 + $0x59] sm:$0xff]  ;;  %2779 = vmatprep.mubr.msk.f32.mxu0 %vm567_vm0, %v734_v37  ;;  %v705_v42 = vld [vmem:[%s3338_s22 + $0x42] sm:$0xff]  ;;  %v706_v47 = vld [vmem:[%s3338_s22 + $0x4a] sm:$0xff] }
  0x1e   : > { %635 = vrot.lane.b32.xlu0 %v593_v17, %s3217_s27  ;;  %870 = vmatprep.subr.mxu0 %v3216_v1  ;;  %723 = vst.msk [vmem:[#allocation2 + $0x88] sm:$0xff] %vm567_vm0, %v705_v42  ;;  %v558_v44 = vld [vmem:[%s3338_s22 + $0x48] sm:$0xff]  ;;  %v772_v48 = vld [vmem:[%s4317_s28 + $0x18] sm:$0xff]  ;;  %724 = vst.msk [vmem:[#allocation2 + $0x98] sm:$0xff] %vm567_vm0, %v706_v47 }
  0x1f   : > { %637 = vrot.lane.b32.xlu1 %v594_v18, %s3217_s27  ;;  %871 = vmatpush1.msra.mxu0 %v776_v23  ;;  %577 = vst.msk [vmem:[#allocation2 + $0x90] sm:$0xff] %vm567_vm0, %v558_v44  ;;  %v599_v45 = vld [vmem:[%s3338_s22 + $0x61] sm:$0xff]  ;;  %v600_v46 = vld [vmem:[%s3338_s22 + $0x69] sm:$0xff]  ;;  %v601_v51 = vld [vmem:[%s3338_s22 + $0x71] sm:$0xff] }
  0x20   : > { %872 = vmatprep.subr.mxu0 %v3216_v1  ;;  %v559_v49 = vld [vmem:[%s3338_s22 + $0x50] sm:$0xff]  ;;  %v602_v52 = vld [vmem:[%s3338_s22 + $0x79] sm:$0xff]  ;;  %v770_v54 = vld [vmem:[%s4317_s28 + $0x8] sm:$0xff] }
  0x21   : > { %873 = vmatpush1.msra.mxu0 %v775_v36  ;;  %v771_v50 = vld [vmem:[%s4317_s28 + $0x10] sm:$0xff]  ;;  %578 = vst.msk [vmem:[#allocation2 + $0xa0] sm:$0xff] %vm567_vm0, %v559_v49  ;;  %v560_v55 = vld [vmem:[%s3338_s22 + $0x58] sm:$0xff]  ;;  %v603_v56 = vld [vmem:[%s3338_s22 + $0x81] sm:$0xff] }
  0x22   : > { %639 = vrot.lane.b32.xlu0 %v595_v33, %s3217_s27  ;;  %874 = vmatprep.subr.mxu0 %v3216_v1  ;;  %v707_v53 = vld [vmem:[%s3338_s22 + $0x52] sm:$0xff]  ;;  %579 = vst.msk [vmem:[#allocation2 + $0xb0] sm:$0xff] %vm567_vm0, %v560_v55  ;;  %v604_v57 = vld [vmem:[%s3338_s22 + $0x89] sm:$0x3f]  ;;  %v708_v58 = vld [vmem:[%s3338_s22 + $0x5a] sm:$0xff] }
  0x23   : > { %641 = vrot.lane.b32.xlu1 %v596_v34, %s3217_s27  ;;  %875 = vmatpush1.msra.mxu0 %v774_v39  ;;  %725 = vst.msk [vmem:[#allocation2 + $0xa8] sm:$0xff] %vm567_vm0, %v707_v53  ;;  %v769_v59 = vld [vmem:[%s4317_s28] sm:$0xff]  ;;  %726 = vst.msk [vmem:[#allocation2 + $0xb8] sm:$0xff] %vm567_vm0, %v708_v58  ;;  %v792_v61 = vld [vmem:[%s4317_s28 + $0xb8] sm:$0xff] }
  0x24   : > { %876 = vmatprep.subr.mxu0 %v3216_v1  ;;  %v561_v60 = vld [vmem:[%s3338_s22 + $0x60] sm:$0xff]  ;;  %v791_v63 = vld [vmem:[%s4317_s28 + $0xb0] sm:$0xff]  ;;  %v562_v0 = vld [vmem:[%s3338_s22 + $0x68] sm:$0xff] }
  0x25   : > { %877 = vmatpush1.msra.mxu0 %v773_v43  ;;  %580 = vst.msk [vmem:[#allocation2 + $0xc0] sm:$0xff] %vm567_vm0, %v561_v60  ;;  %v709_v62 = vld [vmem:[%s3338_s22 + $0x62] sm:$0xff]  ;;  %581 = vst.msk [vmem:[#allocation2 + $0xd0] sm:$0xff] %vm567_vm0, %v562_v0  ;;  %v710_v3 = vld [vmem:[%s3338_s22 + $0x6a] sm:$0xff] }
  0x26   : > { %643 = vrot.lane.b32.xlu0 %v597_v40, %s3217_s27  ;;  %878 = vmatprep.subr.mxu0 %v3216_v1  ;;  %727 = vst.msk [vmem:[#allocation2 + $0xc8] sm:$0xff] %vm567_vm0, %v709_v62  ;;  %v790_v2 = vld [vmem:[%s4317_s28 + $0xa8] sm:$0xff]  ;;  %v789_v4 = vld [vmem:[%s4317_s28 + $0xa0] sm:$0xff]  ;;  %728 = vst.msk [vmem:[#allocation2 + $0xd8] sm:$0xff] %vm567_vm0, %v710_v3 }
  0x27   : > { %645 = vrot.lane.b32.xlu1 %v598_v41, %s3217_s27  ;;  %879 = vmatpush1.msra.mxu0 %v772_v48  ;;  %v563_v5 = vld [vmem:[%s3338_s22 + $0x70] sm:$0xff]  ;;  %v788_v6 = vld [vmem:[%s4317_s28 + $0x98] sm:$0xff]  ;;  %v786_v10 = vld [vmem:[%s4317_s28 + $0x88] sm:$0xff] }
  0x28   : > { %880 = vmatprep.subr.mxu0 %v3216_v1  ;;  %582 = vst.msk [vmem:[#allocation2 + $0xe0] sm:$0xff] %vm567_vm0, %v563_v5  ;;  %v711_v7 = vld [vmem:[%s3338_s22 + $0x72] sm:$0xff]  ;;  %v712_v11 = vld [vmem:[%s3338_s22 + $0x7a] sm:$0xff]  ;;  %v714_v14 = vld [vmem:[%s3338_s22 + $0x8a] sm:$0x3f] }
  0x29   : > { %881 = vmatpush1.msra.mxu0 %v771_v50  ;;  %v787_v8 = vld [vmem:[%s4317_s28 + $0x90] sm:$0xff]  ;;  %729 = vst.msk [vmem:[#allocation2 + $0xe8] sm:$0xff] %vm567_vm0, %v711_v7  ;;  %v564_v9 = vld [vmem:[%s3338_s22 + $0x78] sm:$0xff]  ;;  %v785_v12 = vld [vmem:[%s4317_s28 + $0x80] sm:$0xff] }
  0x2a   : > { %647 = vrot.lane.b32.xlu0 %v599_v45, %s3217_s27  ;;  %882 = vmatprep.subr.mxu0 %v3216_v1  ;;  %583 = vst.msk [vmem:[#allocation2 + $0xf0] sm:$0xff] %vm567_vm0, %v564_v9  ;;  %730 = vst.msk [vmem:[#allocation2 + $0xf8] sm:$0xff] %vm567_vm0, %v712_v11  ;;  %v565_v13 = vld [vmem:[%s3338_s22 + $0x80] sm:$0xff]  ;;  %v566_v16 = vld [vmem:[%s3338_s22 + $0x88] sm:$0x3f] }
  0x2b   : > { %649 = vrot.lane.b32.xlu1 %v600_v46, %s3217_s27  ;;  %883 = vmatpush1.msra.mxu0 %v770_v54  ;;  %v713_v15 = vld [vmem:[%s3338_s22 + $0x82] sm:$0xff]  ;;  %584 = vst.msk [vmem:[#allocation2 + $0x100] sm:$0xff] %vm567_vm0, %v565_v13  ;;  %v736_v21 = vld [vmem:[#allocation2 + $0x18] sm:$0xff] }
  0x2c   : > { %884 = vmatprep.subr.mxu0 %v3216_v1  ;;  %732 = vst.msk [vmem:[#allocation2 + $0x118] sm:$0x3f] %vm585_vm1, %v714_v14  ;;  %586 = vst.msk [vmem:[#allocation2 + $0x110] sm:$0x3f] %vm585_vm1, %v566_v16  ;;  %v738_v25 = vld [vmem:[#allocation2 + $0x28] sm:$0xff]  ;;  %v740_v30 = vld [vmem:[#allocation2 + $0x38] sm:$0xff] }
  0x2d   : > { %885 = vmatpush1.msra.mxu0 %v769_v59  ;;  %731 = vst.msk [vmem:[#allocation2 + $0x108] sm:$0xff] %vm567_vm0, %v713_v15  ;;  %v742_v34 = vld [vmem:[#allocation2 + $0x48] sm:$0xff]  ;;  %v744_v38 = vld [vmem:[#allocation2 + $0x58] sm:$0xff] }
  0x2e   : > { %651 = vrot.lane.b32.xlu0 %v601_v51, %s3217_s27  ;;  %902 = vmatprep.subr.mxu0 %v3216_v1  ;;  %v746_v42 = vld [vmem:[#allocation2 + $0x68] sm:$0xff]  ;;  %v748_v46 = vld [vmem:[#allocation2 + $0x78] sm:$0xff] }
  0x2f   : > { %653 = vrot.lane.b32.xlu1 %v602_v52, %s3217_s27  ;;  %903 = vmatpush2.msra.mxu0 %v792_v61  ;;  %v750_v50 = vld [vmem:[#allocation2 + $0x88] sm:$0xff]  ;;  %v752_v52 = vld [vmem:[#allocation2 + $0x98] sm:$0xff] }
  0x30   : > { %904 = vmatprep.subr.mxu0 %v3216_v1  ;;  %v754_v54 = vld [vmem:[#allocation2 + $0xa8] sm:$0xff]  ;;  %v760_v60 = vld [vmem:[#allocation2 + $0xd8] sm:$0xff] }
  0x31   : > { %905 = vmatpush2.msra.mxu0 %v791_v63  ;;  %v758_v58 = vld [vmem:[#allocation2 + $0xc8] sm:$0xff]  ;;  %v764_v0 = vld [vmem:[#allocation2 + $0xf8] sm:$0xff] }
  0x32   : > { %655 = vrot.lane.b32.xlu0 %v603_v56, %s3217_s27  ;;  %906 = vmatprep.subr.mxu0 %v3216_v1  ;;  %v756_v56 = vld [vmem:[#allocation2 + $0xb8] sm:$0xff]  ;;  %v762_v62 = vld [vmem:[#allocation2 + $0xe8] sm:$0xff] }
  0x33   : > { %657 = vrot.lane.b32.xlu1 %v604_v57, %s3217_s27  ;;  %907 = vmatpush2.msra.mxu0 %v790_v2  ;;  %v768_v5 = vld [vmem:[#allocation2 + $0x118] sm:$0x3f]  ;;  %v1028_v7 = vld [vmem:[%s4299_s3 + $0x8] sm:$0xff] }
  0x34   : > { %908 = vmatprep.subr.mxu0 %v3216_v1  ;;  %v766_v3 = vld [vmem:[#allocation2 + $0x108] sm:$0xff]  ;;  %2798 = vmatprep.mubr.msk.f32.mxu1 %vm1047_vm4, %v1028_v7 }
  0x35   : > { %909 = vmatpush2.msra.mxu0 %v789_v4 }
  0x36   : > { %910 = vmatprep.subr.mxu0 %v3216_v1 }
  0x37   : > { %911 = vmatpush2.msra.mxu0 %v788_v6 }
  0x38   : > { %912 = vmatprep.subr.mxu0 %v3216_v1 }
  0x39   : > { %913 = vmatpush2.msra.mxu0 %v787_v8 }
  0x3a   : > { %914 = vmatprep.subr.mxu0 %v3216_v1 }
  0x3b   : > { %915 = vmatpush2.msra.mxu0 %v786_v10 }
  0x3c   : > { %916 = vmatprep.subr.mxu0 %v3216_v1 }
  0x3d   : > { %917 = vmatpush2.msra.mxu0 %v785_v12 }
  0x3e   : > { %1528 = vmatprep.subr.mxu0 %v3216_v1 }
  0x84   : > { %v624_v17 = vpop.permute.xlu0 %623 }
  0x85   : > { %v628_v18 = vpop.permute.xlu1 %627  ;;  %678 = vst.msk [vmem:[#allocation2] sm:$0xff] %vm677_vm2, %v624_v17 }
  0x86   : > { %680 = vst.msk [vmem:[#allocation2 + $0x20] sm:$0xff] %vm677_vm2, %v628_v18 }
  0x88   : > { %v626_v19 = vpop.permute.xlu0 %625 }
  0x89   : > { %v630_v20 = vpop.permute.xlu1 %629  ;;  %679 = vst.msk [vmem:[#allocation2 + $0x10] sm:$0xff] %vm677_vm2, %v626_v19 }
  0x8a   : > { %681 = vst.msk [vmem:[#allocation2 + $0x30] sm:$0xff] %vm677_vm2, %v630_v20 }
  0x8c   : > { %v733_v22 = vld [vmem:[#allocation2] sm:$0xff]  ;;  %v632_v23 = vpop.permute.xlu0 %631 }
  0x8d   : > { %v634_v24 = vpop.permute.xlu1 %633  ;;  %919 = vmatmul.mubr.f32.vlgmr.msra.gmra.mxu0 %v733_v22  ;;  %682 = vst.msk [vmem:[#allocation2 + $0x40] sm:$0xff] %vm677_vm2, %v632_v23  ;;  %v737_v29 = vld [vmem:[#allocation2 + $0x20] sm:$0xff] }
  0x8e   : > { %683 = vst.msk [vmem:[#allocation2 + $0x50] sm:$0xff] %vm677_vm2, %v634_v24  ;;  %2780 = vmatprep.mubr.msk.f32.mxu0 %vm567_vm0, %v736_v21 }
  0x90   : > { %v735_v26 = vld [vmem:[#allocation2 + $0x10] sm:$0xff]  ;;  %v636_v27 = vpop.permute.xlu0 %635 }
  0x91   : > { %v638_v28 = vpop.permute.xlu1 %637  ;;  %924 = vmatmul.mubr.f32.gmra.mxu0 %v735_v26  ;;  %684 = vst.msk [vmem:[#allocation2 + $0x60] sm:$0xff] %vm677_vm2, %v636_v27  ;;  %v739_v33 = vld [vmem:[#allocation2 + $0x30] sm:$0xff] }
  0x92   : > { %685 = vst.msk [vmem:[#allocation2 + $0x70] sm:$0xff] %vm677_vm2, %v638_v28  ;;  %2781 = vmatprep.mubr.msk.f32.mxu0 %vm567_vm0, %v738_v25 }
  0x94   : > { %v640_v31 = vpop.permute.xlu0 %639  ;;  %v741_v37 = vld [vmem:[#allocation2 + $0x40] sm:$0xff] }
  0x95   : > { %v642_v32 = vpop.permute.xlu1 %641  ;;  %929 = vmatmul.mubr.f32.gmra.mxu0 %v737_v29  ;;  %686 = vst.msk [vmem:[#allocation2 + $0x80] sm:$0xff] %vm677_vm2, %v640_v31  ;;  %v743_v41 = vld [vmem:[#allocation2 + $0x50] sm:$0xff] }
  0x96   : > { %687 = vst.msk [vmem:[#allocation2 + $0x90] sm:$0xff] %vm677_vm2, %v642_v32  ;;  %2782 = vmatprep.mubr.msk.f32.mxu0 %vm567_vm0, %v740_v30 }
  0x98   : > { %v644_v35 = vpop.permute.xlu0 %643  ;;  %v745_v45 = vld [vmem:[#allocation2 + $0x60] sm:$0xff] }
  0x99   : > { %v646_v36 = vpop.permute.xlu1 %645  ;;  %934 = vmatmul.mubr.f32.gmra.mxu0 %v739_v33  ;;  %688 = vst.msk [vmem:[#allocation2 + $0xa0] sm:$0xff] %vm677_vm2, %v644_v35  ;;  %v747_v49 = vld [vmem:[#allocation2 + $0x70] sm:$0xff] }
  0x9a   : > { %689 = vst.msk [vmem:[#allocation2 + $0xb0] sm:$0xff] %vm677_vm2, %v646_v36  ;;  %2783 = vmatprep.mubr.msk.f32.mxu0 %vm567_vm0, %v742_v34 }
  0x9c   : > { %v648_v39 = vpop.permute.xlu0 %647  ;;  %v749_v51 = vld [vmem:[#allocation2 + $0x80] sm:$0xff] }
  0x9d   : > { %v650_v40 = vpop.permute.xlu1 %649  ;;  %939 = vmatmul.mubr.f32.gmra.mxu0 %v741_v37  ;;  %690 = vst.msk [vmem:[#allocation2 + $0xc0] sm:$0xff] %vm677_vm2, %v648_v39  ;;  %v751_v53 = vld [vmem:[#allocation2 + $0x90] sm:$0xff] }
  0x9e   : > { %691 = vst.msk [vmem:[#allocation2 + $0xd0] sm:$0xff] %vm677_vm2, %v650_v40  ;;  %2784 = vmatprep.mubr.msk.f32.mxu0 %vm567_vm0, %v744_v38  ;;  %v3586_v38 = vld [vmem:[%s4298_s2] ss:$0 sm:$0xff] }
  0xa0   : > { %v652_v43 = vpop.permute.xlu0 %651  ;;  %v753_v55 = vld [vmem:[#allocation2 + $0xa0] sm:$0xff] }
  0xa1   : > { %v654_v44 = vpop.permute.xlu1 %653  ;;  %944 = vmatmul.mubr.f32.gmra.mxu0 %v743_v41  ;;  %692 = vst.msk [vmem:[#allocation2 + $0xe0] sm:$0xff] %vm677_vm2, %v652_v43  ;;  %v755_v57 = vld [vmem:[#allocation2 + $0xb0] sm:$0xff] }
  0xa2   : > { %693 = vst.msk [vmem:[#allocation2 + $0xf0] sm:$0xff] %vm677_vm2, %v654_v44  ;;  %2785 = vmatprep.mubr.msk.f32.mxu0 %vm567_vm0, %v746_v42 }
  0xa4   : > { %v656_v47 = vpop.permute.xlu0 %655  ;;  %v757_v59 = vld [vmem:[#allocation2 + $0xc0] sm:$0xff] }
  0xa5   : > { %v658_v48 = vpop.permute.xlu1 %657  ;;  %949 = vmatmul.mubr.f32.gmra.mxu0 %v745_v45  ;;  %694 = vst.msk [vmem:[#allocation2 + $0x100] sm:$0xff] %vm677_vm2, %v656_v47  ;;  %v759_v61 = vld [vmem:[#allocation2 + $0xd0] sm:$0xff] }
  0xa6   : > { %696 = vst.msk [vmem:[#allocation2 + $0x110] sm:$0x3f] %vm695_vm3, %v658_v48  ;;  %2786 = vmatprep.mubr.msk.f32.mxu0 %vm567_vm0, %v748_v46 }
  0xa8   : > { %v761_v63 = vld [vmem:[#allocation2 + $0xe0] sm:$0xff] }
  0xa9   : > { %954 = vmatmul.mubr.f32.gmra.mxu0 %v747_v49  ;;  %v763_v2 = vld [vmem:[#allocation2 + $0xf0] sm:$0xff] }
  0xaa   : > { %2787 = vmatprep.mubr.msk.f32.mxu0 %vm567_vm0, %v750_v50 }
  0xac   : > { %v765_v4 = vld [vmem:[#allocation2 + $0x100] sm:$0xff] }
  0xad   : > { %959 = vmatmul.mubr.f32.gmra.mxu0 %v749_v51  ;;  %v767_v6 = vld [vmem:[#allocation2 + $0x110] sm:$0x3f] }
  0xae   : > { %2788 = vmatprep.mubr.msk.f32.mxu0 %vm567_vm0, %v752_v52 }
  0xb1   : > { %964 = vmatmul.mubr.f32.gmra.mxu0 %v751_v53 }
  0xb2   : > { %2789 = vmatprep.mubr.msk.f32.mxu0 %vm567_vm0, %v754_v54 }
  0xb5   : > { %969 = vmatmul.mubr.f32.gmra.mxu0 %v753_v55 }
  0xb6   : > { %2790 = vmatprep.mubr.msk.f32.mxu0 %vm567_vm0, %v756_v56 }
  0xb9   : > { %974 = vmatmul.mubr.f32.gmra.mxu0 %v755_v57 }
  0xba   : > { %2791 = vmatprep.mubr.msk.f32.mxu0 %vm567_vm0, %v758_v58 }
  0xbd   : > { %979 = vmatmul.mubr.f32.gmra.mxu0 %v757_v59 }
  0xbe   : > { %2792 = vmatprep.mubr.msk.f32.mxu0 %vm567_vm0, %v760_v60 }
  0xc1   : > { %984 = vmatmul.mubr.f32.gmra.mxu0 %v759_v61 }
  0xc2   : > { %2793 = vmatprep.mubr.msk.f32.mxu0 %vm567_vm0, %v762_v62 }
  0xc5   : > { %989 = vmatmul.mubr.f32.gmra.mxu0 %v761_v63 }
  0xc6   : > { %2794 = vmatprep.mubr.msk.f32.mxu0 %vm567_vm0, %v764_v0 }
  0xc9   : > { %994 = vmatmul.mubr.f32.gmra.mxu0 %v763_v2 }
  0xca   : > { %2795 = vmatprep.mubr.msk.f32.mxu0 %vm567_vm0, %v766_v3 }
  0xcd   : > { %999 = vmatmul.mubr.f32.gmra.mxu0 %v765_v4 }
  0xce   : > { %2796 = vmatprep.mubr.msk.f32.mxu0 %vm567_vm0, %v768_v5 }
  0xd1   : > { %1004 = vmatmul.mubr.f32.gmra.mxu0 %v767_v6 }
 0x14d   : > { %v3573_v8 = vpop.f32.mrf.mxu0 }
 0x14f   : > { %v922_v9 = vpop.f32.mrf.mxu0 }
 0x151   : > { %v3575_v10 = vpop.f32.mrf.mxu0 }
 0x152   : > { %v926_v9 = vadd.f32 %v3586_v38, %v3575_v10 }
 0x153   : > { %v927_v11 = vpop.f32.mrf.mxu0 }
 0x155   : > { %v3577_v12 = vpop.f32.mrf.mxu0 }
 0x156   : > { %v931_v6 = vadd.f32 %v3586_v38, %v3577_v12  ;;  %v1010_v12 = vmax.f32 %v926_v9, 0.0 }
 0x157   : > { %v932_v13 = vpop.f32.mrf.mxu0 }
 0x158   : > { %v921_v13 = vadd.f32 %v3586_v38, %v3573_v8 }
 0x159   : > { %v3579_v14 = vpop.f32.mrf.mxu0 }
 0x15a   : > { %v936_v4 = vadd.f32 %v3586_v38, %v3579_v14  ;;  %v1011_v14 = vmax.f32 %v931_v6, 0.0 }
 0x15b   : > { %v937_v15 = vpop.f32.mrf.mxu0 }
 0x15c   : > { %v1012_v11 = vmax.f32 %v936_v4, 0.0 }
 0x15d   : > { %v3581_v16 = vpop.f32.mrf.mxu0 }
 0x15e   : > { %v941_v2 = vadd.f32 %v3586_v38, %v3581_v16  ;;  %v1009_v16 = vmax.f32 %v921_v13, 0.0  ;;  %v1482_v13 = vld [vmem:[%s4301_s5 + $0x78] sm:$0xff] }
 0x15f   : > { %v942_v17 = vpop.f32.mrf.mxu0  ;;  %1529 = vmatpush1.msra.mxu0 %v1482_v13 }
 0x160   : > { %v1013_v7 = vmax.f32 %v941_v2, 0.0  ;;  %1530 = vmatprep.subr.mxu0 %v3216_v1 }
 0x161   : > { %v945_v18 = vpop.f32.mrf.mxu0 }
 0x162   : > { %v946_v63 = vadd.f32 %v3586_v38, %v945_v18  ;;  %v1027_v18 = vld [vmem:[%s4299_s3] sm:$0xff] }
 0x163   : > { %v947_v19 = vpop.f32.mrf.mxu0 }
 0x164   : > { %v1014_v5 = vmax.f32 %v946_v63, 0.0  ;;  %v1212_v19 = vld [vmem:[%s4300_s4 + $0x78] sm:$0xff] }
 0x165   : > { %v950_v20 = vpop.f32.mrf.mxu0 }
 0x166   : > { %v951_v61 = vadd.f32 %v3586_v38, %v950_v20  ;;  %v1030_v20 = vld [vmem:[%s4299_s3 + $0x18] sm:$0xff] }
 0x167   : > { %v952_v21 = vpop.f32.mrf.mxu0 }
 0x168   : > { %v1015_v3 = vmax.f32 %v951_v61, 0.0  ;;  %v1211_v21 = vld [vmem:[%s4300_s4 + $0x70] sm:$0xff] }
 0x169   : > { %v955_v22 = vpop.f32.mrf.mxu0 }
 0x16a   : > { %v956_v59 = vadd.f32 %v3586_v38, %v955_v22  ;;  %v1029_v22 = vld [vmem:[%s4299_s3 + $0x10] sm:$0xff] }
 0x16b   : > { %v957_v23 = vpop.f32.mrf.mxu0 }
 0x16c   : > { %v1016_v0 = vmax.f32 %v956_v59, 0.0  ;;  %v1210_v23 = vld [vmem:[%s4300_s4 + $0x68] sm:$0xff] }
 0x16d   : > { %v960_v24 = vpop.f32.mrf.mxu0 }
 0x16e   : > { %v961_v57 = vadd.f32 %v3586_v38, %v960_v24  ;;  %v1032_v24 = vld [vmem:[%s4299_s3 + $0x28] sm:$0xff] }
 0x16f   : > { %v962_v25 = vpop.f32.mrf.mxu0 }
 0x170   : > { %v1017_v62 = vmax.f32 %v961_v57, 0.0  ;;  %v1209_v25 = vld [vmem:[%s4300_s4 + $0x60] sm:$0xff] }
 0x171   : > { %v965_v26 = vpop.f32.mrf.mxu0 }
 0x172   : > { %v966_v55 = vadd.f32 %v3586_v38, %v965_v26  ;;  %v1031_v26 = vld [vmem:[%s4299_s3 + $0x20] sm:$0xff] }
 0x173   : > { %v967_v27 = vpop.f32.mrf.mxu0 }
 0x174   : > { %v1018_v60 = vmax.f32 %v966_v55, 0.0  ;;  %v1208_v27 = vld [vmem:[%s4300_s4 + $0x58] sm:$0xff] }
 0x175   : > { %v970_v28 = vpop.f32.mrf.mxu0 }
 0x176   : > { %v971_v52 = vadd.f32 %v3586_v38, %v970_v28  ;;  %v1034_v28 = vld [vmem:[%s4299_s3 + $0x38] sm:$0xff] }
 0x177   : > { %v972_v29 = vpop.f32.mrf.mxu0 }
 0x178   : > { %v1019_v58 = vmax.f32 %v971_v52, 0.0  ;;  %v1207_v29 = vld [vmem:[%s4300_s4 + $0x50] sm:$0xff]  ;;  %v1197_v52 = vld [vmem:[%s4300_s4] sm:$0xff] }
 0x179   : > { %v975_v30 = vpop.f32.mrf.mxu0 }
 0x17a   : > { %v976_v49 = vadd.f32 %v3586_v38, %v975_v30  ;;  %v1033_v30 = vld [vmem:[%s4299_s3 + $0x30] sm:$0xff] }
 0x17b   : > { %v977_v31 = vpop.f32.mrf.mxu0 }
 0x17c   : > { %v1020_v56 = vmax.f32 %v976_v49, 0.0  ;;  %v1206_v31 = vld [vmem:[%s4300_s4 + $0x48] sm:$0xff]  ;;  %v1046_v49 = vld [vmem:[%s4299_s3 + $0x98] sm:$0xff] }
 0x17d   : > { %v980_v32 = vpop.f32.mrf.mxu0 }
 0x17e   : > { %v981_v46 = vadd.f32 %v3586_v38, %v980_v32  ;;  %v1036_v32 = vld [vmem:[%s4299_s3 + $0x48] sm:$0xff] }
 0x17f   : > { %v982_v33 = vpop.f32.mrf.mxu0 }
 0x180   : > { %v1021_v53 = vmax.f32 %v981_v46, 0.0  ;;  %v1205_v33 = vld [vmem:[%s4300_s4 + $0x40] sm:$0xff]  ;;  %v1041_v46 = vld [vmem:[%s4299_s3 + $0x70] sm:$0xff] }
 0x181   : > { %v985_v34 = vpop.f32.mrf.mxu0 }
 0x182   : > { %v986_v43 = vadd.f32 %v3586_v38, %v985_v34  ;;  %v1035_v34 = vld [vmem:[%s4299_s3 + $0x40] sm:$0xff] }
 0x183   : > { %v987_v35 = vpop.f32.mrf.mxu0 }
 0x184   : > { %v1022_v50 = vmax.f32 %v986_v43, 0.0  ;;  %v1204_v35 = vld [vmem:[%s4300_s4 + $0x38] sm:$0xff] }
 0x185   : > { %v990_v36 = vpop.f32.mrf.mxu0  ;;  %v1200_v43 = vld [vmem:[%s4300_s4 + $0x18] sm:$0xff] }
 0x186   : > { %v991_v40 = vadd.f32 %v3586_v38, %v990_v36  ;;  %v1038_v36 = vld [vmem:[%s4299_s3 + $0x58] sm:$0xff] }
 0x187   : > { %v992_v37 = vpop.f32.mrf.mxu0 }
 0x188   : > { %v1023_v47 = vmax.f32 %v991_v40, 0.0  ;;  %v1203_v37 = vld [vmem:[%s4300_s4 + $0x30] sm:$0xff]  ;;  %v1040_v40 = vld [vmem:[%s4299_s3 + $0x68] sm:$0xff] }
 0x189   : > { %v995_v39 = vpop.f32.mrf.mxu0 }
 0x18a   : > { %v996_v41 = vadd.f32 %v3586_v38, %v995_v39  ;;  %v1202_v39 = vld [vmem:[%s4300_s4 + $0x28] sm:$0xff] }
 0x18b   : > { %v997_v42 = vpop.f32.mrf.mxu0 }
 0x18c   : > { %v1024_v44 = vmax.f32 %v996_v41, 0.0  ;;  %v1201_v41 = vld [vmem:[%s4300_s4 + $0x20] sm:$0xff] }
 0x18d   : > { %v1000_v45 = vpop.f32.mrf.mxu0  ;;  %v1039_v42 = vld [vmem:[%s4299_s3 + $0x60] sm:$0xff] }
 0x18e   : > { %1083 = vmatpush1.msra.mxu1 %v1024_v44  ;;  %v1001_v10 = vadd.f32 %v3586_v38, %v1000_v45  ;;  %v1042_v44 = vld [vmem:[%s4299_s3 + $0x78] sm:$0xff]  ;;  %v1199_v45 = vld [vmem:[%s4300_s4 + $0x10] sm:$0xff] }
 0x18f   : > { %1084 = vmatprep.subr.mxu1 %v3216_v1  ;;  %v1002_v48 = vpop.f32.mrf.mxu0 }
 0x190   : > { %1085 = vmatpush1.msra.mxu1 %v1023_v47  ;;  %v1025_v8 = vmax.f32 %v1001_v10, 0.0  ;;  %v1044_v47 = vld [vmem:[%s4299_s3 + $0x88] sm:$0xff]  ;;  %v1043_v48 = vld [vmem:[%s4299_s3 + $0x80] sm:$0xff]  ;;  %v1477_v10 = vld [vmem:[%s4301_s5 + $0x50] sm:$0xff] }
 0x191   : > { %1086 = vmatprep.subr.mxu1 %v3216_v1  ;;  %v1005_v51 = vpop.f32.mrf.mxu0 }
 0x192   : > { %1087 = vmatpush1.msra.mxu1 %v1022_v50  ;;  %v1006_v15 = vadd.f32 %v3586_v38, %v1005_v51  ;;  %v1037_v38 = vld [vmem:[%s4299_s3 + $0x50] sm:$0xff]  ;;  %v1198_v51 = vld [vmem:[%s4300_s4 + $0x8] sm:$0xff] }
 0x193   : > { %1088 = vmatprep.subr.mxu1 %v3216_v1  ;;  %v1007_v54 = vpop.f32.mrf.mxu0  ;;  %v1045_v50 = vld [vmem:[%s4299_s3 + $0x90] sm:$0xff] }
 0x194   : > { %1089 = vmatpush1.msra.mxu1 %v1021_v53  ;;  %v1026_v17 = vmax.f32 %v1006_v15, 0.0  ;;  %v1480_v15 = vld [vmem:[%s4301_s5 + $0x68] sm:$0xff] }
 0x195   : > { %1090 = vmatprep.subr.mxu1 %v3216_v1 }
 0x196   : > { %1091 = vmatpush1.msra.mxu1 %v1020_v56 }
 0x197   : > { %1092 = vmatprep.subr.mxu1 %v3216_v1 }
 0x198   : > { %1093 = vmatpush1.msra.mxu1 %v1019_v58 }
 0x199   : > { %1094 = vmatprep.subr.mxu1 %v3216_v1 }
 0x19a   : > { %1095 = vmatpush1.msra.mxu1 %v1018_v60 }
 0x19b   : > { %1096 = vmatprep.subr.mxu1 %v3216_v1 }
 0x19c   : > { %1097 = vmatpush1.msra.mxu1 %v1017_v62 }
 0x19d   : > { %1098 = vmatprep.subr.mxu1 %v3216_v1 }
 0x19e   : > { %1099 = vmatpush1.msra.mxu1 %v1016_v0 }
 0x19f   : > { %1100 = vmatprep.subr.mxu1 %v3216_v1 }
 0x1a0   : > { %1101 = vmatpush1.msra.mxu1 %v1015_v3 }
 0x1a1   : > { %1102 = vmatprep.subr.mxu1 %v3216_v1 }
 0x1a2   : > { %1103 = vmatpush1.msra.mxu1 %v1014_v5 }
 0x1a3   : > { %1104 = vmatprep.subr.mxu1 %v3216_v1 }
 0x1a4   : > { %1105 = vmatpush1.msra.mxu1 %v1013_v7 }
 0x1a5   : > { %1106 = vmatprep.subr.mxu1 %v3216_v1 }
 0x1a6   : > { %1107 = vmatpush1.msra.mxu1 %v1012_v11 }
 0x1a7   : > { %1108 = vmatprep.subr.mxu1 %v3216_v1 }
 0x1a8   : > { %1109 = vmatpush1.msra.mxu1 %v1011_v14  ;;  %v1481_v14 = vld [vmem:[%s4301_s5 + $0x70] sm:$0xff] }
 0x1a9   : > { %1110 = vmatprep.subr.mxu1 %v3216_v1  ;;  %1531 = vmatpush1.msra.mxu0 %v1481_v14 }
 0x1aa   : > { %1111 = vmatpush1.msra.mxu1 %v1010_v12  ;;  %1532 = vmatprep.subr.mxu0 %v3216_v1  ;;  %v1479_v12 = vld [vmem:[%s4301_s5 + $0x60] sm:$0xff] }
 0x1ab   : > { %1112 = vmatprep.subr.mxu1 %v3216_v1  ;;  %1533 = vmatpush1.msra.mxu0 %v1480_v15 }
 0x1ac   : > { %1113 = vmatpush1.msra.mxu1 %v1009_v16  ;;  %1534 = vmatprep.subr.mxu0 %v3216_v1  ;;  %v1478_v16 = vld [vmem:[%s4301_s5 + $0x58] sm:$0xff] }
 0x1ad   : > { %1142 = vmatprep.subr.mxu1 %v3216_v1  ;;  %1535 = vmatpush1.msra.mxu0 %v1479_v12 }
 0x1ae   : > { %2797 = vmatpush2.msk.msra.mxu1 %vm1078_vm5, %v1026_v17  ;;  %1536 = vmatprep.subr.mxu0 %v3216_v1  ;;  %v1476_v17 = vld [vmem:[%s4301_s5 + $0x48] sm:$0xff] }
 0x1af   : > { %1144 = vmatprep.subr.mxu1 %v3216_v1  ;;  %1537 = vmatpush1.msra.mxu0 %v1478_v16 }
 0x1b0   : > { %1145 = vmatpush2.msra.mxu1 %v1025_v8  ;;  %1538 = vmatprep.subr.mxu0 %v3216_v1  ;;  %v1475_v8 = vld [vmem:[%s4301_s5 + $0x40] sm:$0xff] }
 0x1b1   : > { %1147 = vmatmul.mubr.f32.vlgmr.msra.gmra.mxu1 %v1027_v18  ;;  %2972 = vmatprep.subr.mxu1 %v1212_v19  ;;  %v1474_v18 = vld [vmem:[%s4301_s5 + $0x38] sm:$0xff] }
 0x1b2   : > { %2799 = vmatprep.mubr.msk.f32.mxu1 %vm1047_vm4, %v1030_v20  ;;  %2973 = vmatpush3.msra.mxu1 %v1212_v19  ;;  %v1473_v19 = vld [vmem:[%s4301_s5 + $0x30] sm:$0xff]  ;;  %v1472_v20 = vld [vmem:[%s4301_s5 + $0x28] sm:$0xff] }
 0x1b3   : > { %2974 = vmatprep.subr.mxu1 %v1211_v21  ;;  %1539 = vmatpush1.msra.mxu0 %v1477_v10 }
 0x1b4   : > { %2975 = vmatpush3.msra.mxu1 %v1211_v21  ;;  %1540 = vmatprep.subr.mxu0 %v3216_v1  ;;  %v1471_v21 = vld [vmem:[%s4301_s5 + $0x20] sm:$0xff] }
 0x1b5   : > { %1152 = vmatmul.mubr.f32.gmra.mxu1 %v1029_v22  ;;  %2976 = vmatprep.subr.mxu1 %v1210_v23  ;;  %v1470_v22 = vld [vmem:[%s4301_s5 + $0x18] sm:$0xff] }
 0x1b6   : > { %2800 = vmatprep.mubr.msk.f32.mxu1 %vm1047_vm4, %v1032_v24  ;;  %2977 = vmatpush3.msra.mxu1 %v1210_v23  ;;  %v1469_v23 = vld [vmem:[%s4301_s5 + $0x10] sm:$0xff]  ;;  %v1468_v24 = vld [vmem:[%s4301_s5 + $0x8] sm:$0xff] }
 0x1b7   : > { %2978 = vmatprep.subr.mxu1 %v1209_v25  ;;  %1541 = vmatpush1.msra.mxu0 %v1476_v17 }
 0x1b8   : > { %2979 = vmatpush3.msra.mxu1 %v1209_v25  ;;  %1542 = vmatprep.subr.mxu0 %v3216_v1  ;;  %v1467_v25 = vld [vmem:[%s4301_s5] sm:$0xff] }
 0x1b9   : > { %1157 = vmatmul.mubr.f32.gmra.mxu1 %v1031_v26  ;;  %2980 = vmatprep.subr.mxu1 %v1208_v27  ;;  %v1490_v26 = vld [vmem:[%s4301_s5 + $0xb8] sm:$0xff] }
 0x1ba   : > { %2801 = vmatprep.mubr.msk.f32.mxu1 %vm1047_vm4, %v1034_v28  ;;  %2981 = vmatpush3.msra.mxu1 %v1208_v27  ;;  %v1489_v27 = vld [vmem:[%s4301_s5 + $0xb0] sm:$0xff]  ;;  %v1488_v28 = vld [vmem:[%s4301_s5 + $0xa8] sm:$0xff] }
 0x1bb   : > { %2982 = vmatprep.subr.mxu1 %v1207_v29  ;;  %1543 = vmatpush1.msra.mxu0 %v1475_v8 }
 0x1bc   : > { %2983 = vmatpush3.msra.mxu1 %v1207_v29  ;;  %1544 = vmatprep.subr.mxu0 %v3216_v1  ;;  %v1487_v29 = vld [vmem:[%s4301_s5 + $0xa0] sm:$0xff] }
 0x1bd   : > { %1162 = vmatmul.mubr.f32.gmra.mxu1 %v1033_v30  ;;  %2984 = vmatprep.subr.mxu1 %v1206_v31  ;;  %v1486_v30 = vld [vmem:[%s4301_s5 + $0x98] sm:$0xff] }
 0x1be   : > { %2802 = vmatprep.mubr.msk.f32.mxu1 %vm1047_vm4, %v1036_v32  ;;  %2985 = vmatpush3.msra.mxu1 %v1206_v31  ;;  %v1485_v31 = vld [vmem:[%s4301_s5 + $0x90] sm:$0xff]  ;;  %v1484_v32 = vld [vmem:[%s4301_s5 + $0x88] sm:$0xff] }
 0x1bf   : > { %2986 = vmatprep.subr.mxu1 %v1205_v33  ;;  %1545 = vmatpush1.msra.mxu0 %v1474_v18 }
 0x1c0   : > { %2987 = vmatpush3.msra.mxu1 %v1205_v33  ;;  %1546 = vmatprep.subr.mxu0 %v3216_v1  ;;  %v1483_v33 = vld [vmem:[%s4301_s5 + $0x80] sm:$0xff] }
 0x1c1   : > { %1167 = vmatmul.mubr.f32.gmra.mxu1 %v1035_v34  ;;  %2988 = vmatprep.subr.mxu1 %v1204_v35 }
 0x1c2   : > { %2803 = vmatprep.mubr.msk.f32.mxu1 %vm1047_vm4, %v1038_v36  ;;  %2989 = vmatpush3.msra.mxu1 %v1204_v35 }
 0x1c3   : > { %2990 = vmatprep.subr.mxu1 %v1203_v37  ;;  %1547 = vmatpush1.msra.mxu0 %v1473_v19 }
 0x1c4   : > { %2991 = vmatpush3.msra.mxu1 %v1203_v37  ;;  %1548 = vmatprep.subr.mxu0 %v3216_v1 }
 0x1c5   : > { %1172 = vmatmul.mubr.f32.gmra.mxu1 %v1037_v38  ;;  %2992 = vmatprep.subr.mxu1 %v1202_v39 }
 0x1c6   : > { %2804 = vmatprep.mubr.msk.f32.mxu1 %vm1047_vm4, %v1040_v40  ;;  %2993 = vmatpush3.msra.mxu1 %v1202_v39 }
 0x1c7   : > { %2994 = vmatprep.subr.mxu1 %v1201_v41  ;;  %1549 = vmatpush1.msra.mxu0 %v1472_v20 }
 0x1c8   : > { %2995 = vmatpush3.msra.mxu1 %v1201_v41  ;;  %1550 = vmatprep.subr.mxu0 %v3216_v1 }
 0x1c9   : > { %1177 = vmatmul.mubr.f32.gmra.mxu1 %v1039_v42  ;;  %2996 = vmatprep.subr.mxu1 %v1200_v43 }
 0x1ca   : > { %2805 = vmatprep.mubr.msk.f32.mxu1 %vm1047_vm4, %v1042_v44  ;;  %2997 = vmatpush3.msra.mxu1 %v1200_v43 }
 0x1cb   : > { %2998 = vmatprep.subr.mxu1 %v1199_v45  ;;  %1551 = vmatpush1.msra.mxu0 %v1471_v21 }
 0x1cc   : > { %2999 = vmatpush3.msra.mxu1 %v1199_v45  ;;  %1552 = vmatprep.subr.mxu0 %v3216_v1 }
 0x1cd   : > { %1182 = vmatmul.mubr.f32.gmra.mxu1 %v1041_v46  ;;  %3000 = vmatprep.subr.mxu1 %v1198_v51 }
 0x1ce   : > { %2806 = vmatprep.mubr.msk.f32.mxu1 %vm1047_vm4, %v1044_v47  ;;  %3001 = vmatpush3.msra.mxu1 %v1198_v51 }
 0x1cf   : > { %3002 = vmatprep.subr.mxu1 %v1197_v52  ;;  %1553 = vmatpush1.msra.mxu0 %v1470_v22 }
 0x1d0   : > { %3003 = vmatpush3.msra.mxu1 %v1197_v52  ;;  %1554 = vmatprep.subr.mxu0 %v3216_v1 }
 0x1d1   : > { %1187 = vmatmul.mubr.f32.gmra.mxu1 %v1043_v48  ;;  %1555 = vmatpush1.msra.mxu0 %v1469_v23 }
 0x1d2   : > { %2807 = vmatprep.mubr.msk.f32.mxu1 %vm1047_vm4, %v1046_v49  ;;  %1556 = vmatprep.subr.mxu0 %v3216_v1 }
 0x1d3   : > { %1557 = vmatpush1.msra.mxu0 %v1468_v24 }
 0x1d4   : > { %1558 = vmatprep.subr.mxu0 %v3216_v1 }
 0x1d5   : > { %1192 = vmatmul.mubr.f32.gmra.mxu1 %v1045_v50  ;;  %1559 = vmatpush1.msra.mxu0 %v1467_v25 }
 0x1d6   : > { %1576 = vmatprep.subr.mxu0 %v3216_v1 }
 0x1d7   : > { %1577 = vmatpush2.msra.mxu0 %v1490_v26 }
 0x1d8   : > { %1578 = vmatprep.subr.mxu0 %v3216_v1 }
 0x1d9   : > { %1579 = vmatpush2.msra.mxu0 %v1489_v27 }
 0x1da   : > { %1580 = vmatprep.subr.mxu0 %v3216_v1 }
 0x1db   : > { %1581 = vmatpush2.msra.mxu0 %v1488_v28 }
 0x1dc   : > { %1582 = vmatprep.subr.mxu0 %v3216_v1 }
 0x1dd   : > { %1583 = vmatpush2.msra.mxu0 %v1487_v29 }
 0x1de   : > { %1584 = vmatprep.subr.mxu0 %v3216_v1 }
 0x1df   : > { %1585 = vmatpush2.msra.mxu0 %v1486_v30 }
 0x1e0   : > { %1586 = vmatprep.subr.mxu0 %v3216_v1 }
 0x1e1   : > { %1587 = vmatpush2.msra.mxu0 %v1485_v31 }
 0x1e2   : > { %1588 = vmatprep.subr.mxu0 %v3216_v1 }
 0x1e3   : > { %1589 = vmatpush2.msra.mxu0 %v1484_v32 }
 0x1e4   : > { %1590 = vmatprep.subr.mxu0 %v3216_v1 }
 0x1e5   : > { %1591 = vmatpush2.msra.mxu0 %v1483_v33 }
 0x1e6   : > { %2024 = vmatprep.subr.mxu0 %v3216_v1 }
 0x271   : > { %v1148_v53 = vpop.f32.mrf.mxu1 }
 0x272   : > { %3004 = vmatprep.mubr.f32.mxu1 %v1148_v53 }
 0x273   : > { %v1150_v54 = vpop.f32.mrf.mxu1 }
 0x275   : > { %v1153_v55 = vpop.f32.mrf.mxu1 }
 0x276   : > { %3005 = vmatmul.mubr.f32.vlgmr.msra.gmra.mxu1 %v1153_v55 }
 0x277   : > { %v1155_v56 = vpop.f32.mrf.mxu1 }
 0x279   : > { %v1158_v57 = vpop.f32.mrf.mxu1 }
 0x27a   : > { %3007 = vmatprep.mubr.f32.mxu1 %v1158_v57 }
 0x27b   : > { %v1160_v58 = vpop.f32.mrf.mxu1 }
 0x27d   : > { %v1163_v59 = vpop.f32.mrf.mxu1 }
 0x27e   : > { %3008 = vmatmul.mubr.f32.gmra.mxu1 %v1163_v59 }
 0x27f   : > { %v1165_v60 = vpop.f32.mrf.mxu1 }
 0x281   : > { %v1168_v61 = vpop.f32.mrf.mxu1 }
 0x282   : > { %3010 = vmatprep.mubr.f32.mxu1 %v1168_v61 }
 0x283   : > { %v1170_v62 = vpop.f32.mrf.mxu1 }
 0x285   : > { %v1173_v63 = vpop.f32.mrf.mxu1 }
 0x286   : > { %3011 = vmatmul.mubr.f32.gmra.mxu1 %v1173_v63 }
 0x287   : > { %v1175_v0 = vpop.f32.mrf.mxu1 }
 0x289   : > { %v1178_v2 = vpop.f32.mrf.mxu1 }
 0x28a   : > { %3013 = vmatprep.mubr.f32.mxu1 %v1178_v2 }
 0x28b   : > { %v1180_v3 = vpop.f32.mrf.mxu1 }
 0x28d   : > { %v1183_v4 = vpop.f32.mrf.mxu1 }
 0x28e   : > { %3014 = vmatmul.mubr.f32.gmra.mxu1 %v1183_v4 }
 0x28f   : > { %v1185_v5 = vpop.f32.mrf.mxu1 }
 0x291   : > { %v1188_v6 = vpop.f32.mrf.mxu1 }
 0x292   : > { %3016 = vmatprep.mubr.f32.mxu1 %v1188_v6 }
 0x293   : > { %v1190_v7 = vpop.f32.mrf.mxu1 }
 0x295   : > { %v1193_v9 = vpop.f32.mrf.mxu1 }
 0x296   : > { %3017 = vmatmul.mubr.f32.gmra.mxu1 %v1193_v9 }
 0x297   : > { %v1195_v11 = vpop.f32.mrf.mxu1 }
 0x336   : > { %v3006_v34 = vpop.f32.mrf.mxu1 }
 0x337   : > { %1329 = vst.msk [vmem:[#allocation3 + $0x10] sm:$0xff] %vm567_vm0, %v3006_v34  ;;  %v1350_v36 = vrot.slane %v3006_v34, 1  ;;  %v1409_v37 = vrot.slane %v3006_v34, 2 }
 0x338   : > { %v1279_v35 = vpop.f32.mrf.mxu1 }
 0x339   : > { %1328 = vst.msk [vmem:[#allocation3] sm:$0xff] %vm567_vm0, %v1279_v35  ;;  %v1349_v38 = vrot.slane %v1279_v35, 1  ;;  %v1408_v39 = vrot.slane %v1279_v35, 2 }
 0x33b   : > { %v1410_v40 = vsel %vm1078_vm5, %v1408_v39, %v1409_v37  ;;  %v1351_v41 = vsel %vm1348_vm6, %v1349_v38, %v1350_v36 }
 0x33c   : > { %1437 = vst.msk [vmem:[#allocation3 + $0x8] sm:$0xff] %vm567_vm0, %v1410_v40  ;;  %1368 = vrot.lane.b32.xlu0 %v1351_v41, %s3217_s27 }
 0x33e   : > { %v3009_v42 = vpop.f32.mrf.mxu1 }
 0x33f   : > { %1331 = vst.msk [vmem:[#allocation3 + $0x30] sm:$0xff] %vm567_vm0, %v3009_v42  ;;  %v1354_v44 = vrot.slane %v3009_v42, 1  ;;  %v1413_v45 = vrot.slane %v3009_v42, 2 }
 0x340   : > { %v1289_v43 = vpop.f32.mrf.mxu1 }
 0x341   : > { %1330 = vst.msk [vmem:[#allocation3 + $0x20] sm:$0xff] %vm567_vm0, %v1289_v43  ;;  %v1352_v46 = vrot.slane %v1289_v43, 1  ;;  %v1411_v47 = vrot.slane %v1289_v43, 2 }
 0x343   : > { %v1412_v48 = vsel %vm1078_vm5, %v1409_v37, %v1411_v47  ;;  %v1414_v49 = vsel %vm1078_vm5, %v1411_v47, %v1413_v45  ;;  %v1448_v50 = vld [vmem:[#allocation3 + $0x8] sm:$0xff]  ;;  %v1355_v51 = vsel %vm1348_vm6, %v1352_v46, %v1354_v44  ;;  %v1353_v52 = vsel %vm1348_vm6, %v1350_v36, %v1352_v46 }
 0x344   : > { %1438 = vst.msk [vmem:[#allocation3 + $0x18] sm:$0xff] %vm567_vm0, %v1412_v48  ;;  %1439 = vst.msk [vmem:[#allocation3 + $0x28] sm:$0xff] %vm567_vm0, %v1414_v49  ;;  %2809 = vmatprep.mubr.msk.f32.mxu0 %vm567_vm0, %v1448_v50  ;;  %1372 = vrot.lane.b32.xlu0 %v1355_v51, %s3217_s27  ;;  %v1653_v49 = vld [vmem:[%s4303_s7] sm:$0xff] }
 0x345   : > { %1370 = vrot.lane.b32.xlu1 %v1353_v52, %s3217_s27  ;;  %3039 = vmatprep.mubr.msk.f32.mxu1 %vm1659_vm7, %v1653_v49 }
 0x346   : > { %v3012_v53 = vpop.f32.mrf.mxu1 }
 0x347   : > { %1333 = vst.msk [vmem:[#allocation3 + $0x50] sm:$0xff] %vm567_vm0, %v3012_v53  ;;  %v1358_v55 = vrot.slane %v3012_v53, 1  ;;  %v1417_v56 = vrot.slane %v3012_v53, 2 }
 0x348   : > { %v1299_v54 = vpop.f32.mrf.mxu1 }
 0x349   : > { %1332 = vst.msk [vmem:[#allocation3 + $0x40] sm:$0xff] %vm567_vm0, %v1299_v54  ;;  %v1356_v57 = vrot.slane %v1299_v54, 1  ;;  %v1415_v58 = vrot.slane %v1299_v54, 2 }
 0x34b   : > { %v1416_v59 = vsel %vm1078_vm5, %v1413_v45, %v1415_v58  ;;  %v1418_v60 = vsel %vm1078_vm5, %v1415_v58, %v1417_v56  ;;  %v1359_v61 = vsel %vm1348_vm6, %v1356_v57, %v1358_v55  ;;  %v1357_v62 = vsel %vm1348_vm6, %v1354_v44, %v1356_v57  ;;  %v1450_v24 = vld [vmem:[#allocation3 + $0x18] sm:$0xff]  ;;  %v1452_v28 = vld [vmem:[#allocation3 + $0x28] sm:$0xff] }
 0x34c   : > { %1440 = vst.msk [vmem:[#allocation3 + $0x38] sm:$0xff] %vm567_vm0, %v1416_v59  ;;  %1441 = vst.msk [vmem:[#allocation3 + $0x48] sm:$0xff] %vm567_vm0, %v1418_v60  ;;  %1376 = vrot.lane.b32.xlu0 %v1359_v61, %s3217_s27  ;;  %1374 = vrot.lane.b32.xlu1 %v1357_v62, %s3217_s27 }
 0x34e   : > { %v3015_v63 = vpop.f32.mrf.mxu1 }
 0x34f   : > { %1335 = vst.msk [vmem:[#allocation3 + $0x70] sm:$0xff] %vm567_vm0, %v3015_v63  ;;  %v1362_v2 = vrot.slane %v3015_v63, 1  ;;  %v1421_v3 = vrot.slane %v3015_v63, 2 }
 0x350   : > { %v1309_v0 = vpop.f32.mrf.mxu1 }
 0x351   : > { %1334 = vst.msk [vmem:[#allocation3 + $0x60] sm:$0xff] %vm567_vm0, %v1309_v0  ;;  %v1360_v4 = vrot.slane %v1309_v0, 1  ;;  %v1419_v5 = vrot.slane %v1309_v0, 2 }
 0x353   : > { %v1420_v6 = vsel %vm1078_vm5, %v1417_v56, %v1419_v5  ;;  %v1422_v7 = vsel %vm1078_vm5, %v1419_v5, %v1421_v3  ;;  %v1363_v9 = vsel %vm1348_vm6, %v1360_v4, %v1362_v2  ;;  %v1361_v11 = vsel %vm1348_vm6, %v1358_v55, %v1360_v4  ;;  %v1454_v30 = vld [vmem:[#allocation3 + $0x38] sm:$0xff]  ;;  %v1456_v34 = vld [vmem:[#allocation3 + $0x48] sm:$0xff]  ;;  %v2808_v5 = vld [vmem:[%s4302_s6] ss:$0 sm:$0xff] }
 0x354   : > { %1442 = vst.msk [vmem:[#allocation3 + $0x58] sm:$0xff] %vm567_vm0, %v1420_v6  ;;  %1443 = vst.msk [vmem:[#allocation3 + $0x68] sm:$0xff] %vm567_vm0, %v1422_v7  ;;  %1380 = vrot.lane.b32.xlu0 %v1363_v9, %s3217_s27  ;;  %1378 = vrot.lane.b32.xlu1 %v1361_v11, %s3217_s27 }
 0x356   : > { %v3018_v13 = vpop.f32.mrf.mxu1 }
 0x357   : > { %1337 = vst.msk [vmem:[#allocation3 + $0x90] sm:$0x3f] %vm585_vm1, %v3018_v13  ;;  %v1425_v14 = vrot.slane %v3018_v13, 2  ;;  %v1366_v12 = vrot.slane %v3018_v13, 1 }
 0x358   : > { %v1319_v15 = vpop.f32.mrf.mxu1 }
 0x359   : > { %1446 = vst.msk [vmem:[#allocation3 + $0x98] sm:$0x3f] %vm585_vm1, %v1425_v14  ;;  %v1364_v16 = vrot.slane %v1319_v15, 1  ;;  %v1423_v10 = vrot.slane %v1319_v15, 2 }
 0x35a   : > { %1336 = vst.msk [vmem:[#allocation3 + $0x80] sm:$0xff] %vm567_vm0, %v1319_v15 }
 0x35b   : > { %v1424_v17 = vsel %vm1078_vm5, %v1421_v3, %v1423_v10  ;;  %v1426_v8 = vsel %vm1078_vm5, %v1423_v10, %v1425_v14  ;;  %v1367_v18 = vsel %vm1348_vm6, %v1364_v16, %v1366_v12  ;;  %v1365_v19 = vsel %vm1348_vm6, %v1362_v2, %v1364_v16  ;;  %v1458_v36 = vld [vmem:[#allocation3 + $0x58] sm:$0xff]  ;;  %v1460_v40 = vld [vmem:[#allocation3 + $0x68] sm:$0xff] }
 0x35c   : > { %1444 = vst.msk [vmem:[#allocation3 + $0x78] sm:$0xff] %vm567_vm0, %v1424_v17  ;;  %1445 = vst.msk [vmem:[#allocation3 + $0x88] sm:$0xff] %vm567_vm0, %v1426_v8  ;;  %1384 = vrot.lane.b32.xlu0 %v1367_v18, %s3217_s27  ;;  %1382 = vrot.lane.b32.xlu1 %v1365_v19, %s3217_s27 }
 0x360   : > { %1386 = vrot.lane.b32.xlu1 %v1366_v12, %s3217_s27  ;;  %v1466_v47 = vld [vmem:[#allocation3 + $0x98] sm:$0x3f] }
 0x363   : > { %v1462_v43 = vld [vmem:[#allocation3 + $0x78] sm:$0xff]  ;;  %v1464_v45 = vld [vmem:[#allocation3 + $0x88] sm:$0xff] }
 0x3ae   : > { %v1369_v20 = vpop.permute.xlu0 %1368 }
 0x3af   : > { %1398 = vst.msk [vmem:[#allocation3] sm:$0xff] %vm677_vm2, %v1369_v20 }
 0x3b6   : > { %v1373_v21 = vpop.permute.xlu0 %1372  ;;  %v1447_v22 = vld [vmem:[#allocation3] sm:$0xff] }
 0x3b7   : > { %1400 = vst.msk [vmem:[#allocation3 + $0x20] sm:$0xff] %vm677_vm2, %v1373_v21  ;;  %v1371_v23 = vpop.permute.xlu1 %1370  ;;  %1593 = vmatmul.mubr.f32.vlgmr.msra.gmra.mxu0 %v1447_v22 }
 0x3b8   : > { %1399 = vst.msk [vmem:[#allocation3 + $0x10] sm:$0xff] %vm677_vm2, %v1371_v23  ;;  %2810 = vmatprep.mubr.msk.f32.mxu0 %vm567_vm0, %v1450_v24 }
 0x3be   : > { %v1377_v25 = vpop.permute.xlu0 %1376  ;;  %v1375_v26 = vpop.permute.xlu1 %1374  ;;  %v1451_v29 = vld [vmem:[#allocation3 + $0x20] sm:$0xff] }
 0x3bf   : > { %1402 = vst.msk [vmem:[#allocation3 + $0x40] sm:$0xff] %vm677_vm2, %v1377_v25  ;;  %1401 = vst.msk [vmem:[#allocation3 + $0x30] sm:$0xff] %vm677_vm2, %v1375_v26  ;;  %v1449_v27 = vld [vmem:[#allocation3 + $0x10] sm:$0xff] }
 0x3c0   : > { %1598 = vmatmul.mubr.f32.gmra.mxu0 %v1449_v27 }
 0x3c1   : > { %2811 = vmatprep.mubr.msk.f32.mxu0 %vm567_vm0, %v1452_v28  ;;  %v1654_v28 = vld [vmem:[%s4303_s7 + $0x8] sm:$0xff] }
 0x3c4   : > { %1603 = vmatmul.mubr.f32.gmra.mxu0 %v1451_v29  ;;  %v1791_v29 = vld [vmem:[%s4304_s8 + $0x78] sm:$0xff] }
 0x3c5   : > { %2812 = vmatprep.mubr.msk.f32.mxu0 %vm567_vm0, %v1454_v30  ;;  %v1655_v30 = vld [vmem:[%s4303_s7 + $0x10] sm:$0xff] }
 0x3c6   : > { %v1381_v31 = vpop.permute.xlu0 %1380  ;;  %v1379_v32 = vpop.permute.xlu1 %1378  ;;  %v1453_v33 = vld [vmem:[#allocation3 + $0x30] sm:$0xff]  ;;  %v1455_v35 = vld [vmem:[#allocation3 + $0x40] sm:$0xff] }
 0x3c7   : > { %1404 = vst.msk [vmem:[#allocation3 + $0x60] sm:$0xff] %vm677_vm2, %v1381_v31  ;;  %1403 = vst.msk [vmem:[#allocation3 + $0x50] sm:$0xff] %vm677_vm2, %v1379_v32  ;;  %v1790_v31 = vld [vmem:[%s4304_s8 + $0x70] sm:$0xff]  ;;  %v1656_v32 = vld [vmem:[%s4303_s7 + $0x18] sm:$0xff] }
 0x3c8   : > { %1608 = vmatmul.mubr.f32.gmra.mxu0 %v1453_v33  ;;  %v1789_v33 = vld [vmem:[%s4304_s8 + $0x68] sm:$0xff] }
 0x3c9   : > { %2813 = vmatprep.mubr.msk.f32.mxu0 %vm567_vm0, %v1456_v34  ;;  %v1657_v34 = vld [vmem:[%s4303_s7 + $0x20] sm:$0xff] }
 0x3cc   : > { %1613 = vmatmul.mubr.f32.gmra.mxu0 %v1455_v35  ;;  %v1788_v35 = vld [vmem:[%s4304_s8 + $0x60] sm:$0xff] }
 0x3cd   : > { %2814 = vmatprep.mubr.msk.f32.mxu0 %vm567_vm0, %v1458_v36  ;;  %v1658_v36 = vld [vmem:[%s4303_s7 + $0x28] sm:$0xff] }
 0x3ce   : > { %v1385_v37 = vpop.permute.xlu0 %1384  ;;  %v1383_v38 = vpop.permute.xlu1 %1382  ;;  %v1457_v39 = vld [vmem:[#allocation3 + $0x50] sm:$0xff]  ;;  %v1459_v42 = vld [vmem:[#allocation3 + $0x60] sm:$0xff] }
 0x3cf   : > { %1406 = vst.msk [vmem:[#allocation3 + $0x80] sm:$0xff] %vm677_vm2, %v1385_v37  ;;  %1405 = vst.msk [vmem:[#allocation3 + $0x70] sm:$0xff] %vm677_vm2, %v1383_v38  ;;  %v1787_v37 = vld [vmem:[%s4304_s8 + $0x58] sm:$0xff]  ;;  %v1786_v38 = vld [vmem:[%s4304_s8 + $0x50] sm:$0xff] }
 0x3d0   : > { %1618 = vmatmul.mubr.f32.gmra.mxu0 %v1457_v39  ;;  %v1785_v39 = vld [vmem:[%s4304_s8 + $0x48] sm:$0xff] }
 0x3d1   : > { %2815 = vmatprep.mubr.msk.f32.mxu0 %vm567_vm0, %v1460_v40  ;;  %v1784_v40 = vld [vmem:[%s4304_s8 + $0x40] sm:$0xff] }
 0x3d2   : > { %v1387_v41 = vpop.permute.xlu1 %1386 }
 0x3d3   : > { %1407 = vst.msk [vmem:[#allocation3 + $0x90] sm:$0x3f] %vm695_vm3, %v1387_v41  ;;  %v1783_v41 = vld [vmem:[%s4304_s8 + $0x38] sm:$0xff] }
 0x3d4   : > { %1623 = vmatmul.mubr.f32.gmra.mxu0 %v1459_v42  ;;  %v1782_v42 = vld [vmem:[%s4304_s8 + $0x30] sm:$0xff] }
 0x3d5   : > { %2816 = vmatprep.mubr.msk.f32.mxu0 %vm567_vm0, %v1462_v43  ;;  %v1781_v43 = vld [vmem:[%s4304_s8 + $0x28] sm:$0xff] }
 0x3d6   : > { %v1461_v44 = vld [vmem:[#allocation3 + $0x70] sm:$0xff]  ;;  %v1463_v46 = vld [vmem:[#allocation3 + $0x80] sm:$0xff] }
 0x3d8   : > { %1628 = vmatmul.mubr.f32.gmra.mxu0 %v1461_v44  ;;  %v1780_v44 = vld [vmem:[%s4304_s8 + $0x20] sm:$0xff] }
 0x3d9   : > { %2817 = vmatprep.mubr.msk.f32.mxu0 %vm567_vm0, %v1464_v45  ;;  %v1779_v45 = vld [vmem:[%s4304_s8 + $0x18] sm:$0xff] }
 0x3da   : > { %v1465_v48 = vld [vmem:[#allocation3 + $0x90] sm:$0x3f] }
 0x3dc   : > { %1633 = vmatmul.mubr.f32.gmra.mxu0 %v1463_v46  ;;  %v1778_v46 = vld [vmem:[%s4304_s8 + $0x10] sm:$0xff] }
 0x3dd   : > { %2818 = vmatprep.mubr.msk.f32.mxu0 %vm567_vm0, %v1466_v47  ;;  %v1777_v47 = vld [vmem:[%s4304_s8 + $0x8] sm:$0xff] }
 0x3e0   : > { %1638 = vmatmul.mubr.f32.gmra.mxu0 %v1465_v48  ;;  %v1776_v48 = vld [vmem:[%s4304_s8] sm:$0xff] }
 0x477   : > { %v1594_v50 = vpop.f32.mrf.mxu0 }
 0x478   : > { %v1595_v24 = vadd.f32 %v2808_v5, %v1594_v50 }
 0x479   : > { %v1596_v51 = vpop.f32.mrf.mxu0 }
 0x47a   : > { %v1643_v27 = vmax.f32 %v1595_v24, 0.0 }
 0x480   : > { %v1599_v52 = vpop.f32.mrf.mxu0 }
 0x481   : > { %v1600_v22 = vadd.f32 %v2808_v5, %v1599_v52 }
 0x482   : > { %v1601_v53 = vpop.f32.mrf.mxu0 }
 0x483   : > { %v1644_v26 = vmax.f32 %v1600_v22, 0.0 }
 0x484   : > { %v1604_v54 = vpop.f32.mrf.mxu0 }
 0x485   : > { %v1605_v20 = vadd.f32 %v2808_v5, %v1604_v54 }
 0x486   : > { %v1606_v55 = vpop.f32.mrf.mxu0 }
 0x487   : > { %v1645_v25 = vmax.f32 %v1605_v20, 0.0  ;;  %v1990_v55 = vld [vmem:[%s4305_s9 + $0x78] sm:$0xff] }
 0x488   : > { %v1609_v56 = vpop.f32.mrf.mxu0  ;;  %2025 = vmatpush1.msra.mxu0 %v1990_v55 }
 0x489   : > { %v1610_v18 = vadd.f32 %v2808_v5, %v1609_v56  ;;  %v1989_v56 = vld [vmem:[%s4305_s9 + $0x70] sm:$0xff]  ;;  %2026 = vmatprep.subr.mxu0 %v3216_v1 }
 0x48a   : > { %v1611_v57 = vpop.f32.mrf.mxu0  ;;  %2027 = vmatpush1.msra.mxu0 %v1989_v56 }
 0x48b   : > { %v1646_v23 = vmax.f32 %v1610_v18, 0.0  ;;  %v1988_v57 = vld [vmem:[%s4305_s9 + $0x68] sm:$0xff]  ;;  %2028 = vmatprep.subr.mxu0 %v3216_v1 }
 0x48c   : > { %v1614_v58 = vpop.f32.mrf.mxu0  ;;  %2029 = vmatpush1.msra.mxu0 %v1988_v57 }
 0x48d   : > { %v1615_v17 = vadd.f32 %v2808_v5, %v1614_v58  ;;  %v1987_v58 = vld [vmem:[%s4305_s9 + $0x60] sm:$0xff]  ;;  %2030 = vmatprep.subr.mxu0 %v3216_v1 }
 0x48e   : > { %v1616_v59 = vpop.f32.mrf.mxu0  ;;  %2031 = vmatpush1.msra.mxu0 %v1987_v58 }
 0x48f   : > { %v1647_v21 = vmax.f32 %v1615_v17, 0.0  ;;  %v1986_v59 = vld [vmem:[%s4305_s9 + $0x58] sm:$0xff]  ;;  %2032 = vmatprep.subr.mxu0 %v3216_v1 }
 0x490   : > { %v1619_v60 = vpop.f32.mrf.mxu0  ;;  %2033 = vmatpush1.msra.mxu0 %v1986_v59 }
 0x491   : > { %v1620_v16 = vadd.f32 %v2808_v5, %v1619_v60  ;;  %v1985_v60 = vld [vmem:[%s4305_s9 + $0x50] sm:$0xff]  ;;  %2034 = vmatprep.subr.mxu0 %v3216_v1 }
 0x492   : > { %v1621_v61 = vpop.f32.mrf.mxu0  ;;  %2035 = vmatpush1.msra.mxu0 %v1985_v60 }
 0x493   : > { %v1648_v19 = vmax.f32 %v1620_v16, 0.0  ;;  %v1984_v61 = vld [vmem:[%s4305_s9 + $0x48] sm:$0xff]  ;;  %2036 = vmatprep.subr.mxu0 %v3216_v1 }
 0x494   : > { %v1624_v62 = vpop.f32.mrf.mxu0  ;;  %2037 = vmatpush1.msra.mxu0 %v1984_v61  ;;  %v1992_v16 = vld [vmem:[%s4305_s9 + $0x88] sm:$0xff] }
 0x495   : > { %v1625_v15 = vadd.f32 %v2808_v5, %v1624_v62  ;;  %v1983_v62 = vld [vmem:[%s4305_s9 + $0x40] sm:$0xff]  ;;  %2038 = vmatprep.subr.mxu0 %v3216_v1 }
 0x496   : > { %v1626_v63 = vpop.f32.mrf.mxu0  ;;  %2039 = vmatpush1.msra.mxu0 %v1983_v62  ;;  %v2125_v62 = vld [vmem:[%s4307_s11] sm:$0xff] }
 0x497   : > { %v1649_v8 = vmax.f32 %v1625_v15, 0.0  ;;  %v1982_v63 = vld [vmem:[%s4305_s9 + $0x38] sm:$0xff]  ;;  %2040 = vmatprep.subr.mxu0 %v3216_v1 }
 0x498   : > { %v1629_v0 = vpop.f32.mrf.mxu0  ;;  %2041 = vmatpush1.msra.mxu0 %v1982_v63  ;;  %v1994_v15 = vld [vmem:[%s4305_s9 + $0x98] sm:$0xff] }
 0x499   : > { %v1630_v13 = vadd.f32 %v2808_v5, %v1629_v0  ;;  %v1981_v0 = vld [vmem:[%s4305_s9 + $0x30] sm:$0xff]  ;;  %2042 = vmatprep.subr.mxu0 %v3216_v1 }
 0x49a   : > { %v1631_v2 = vpop.f32.mrf.mxu0  ;;  %2043 = vmatpush1.msra.mxu0 %v1981_v0 }
 0x49b   : > { %v1650_v10 = vmax.f32 %v1630_v13, 0.0  ;;  %v1980_v2 = vld [vmem:[%s4305_s9 + $0x28] sm:$0xff]  ;;  %2044 = vmatprep.subr.mxu0 %v3216_v1 }
 0x49c   : > { %v1634_v3 = vpop.f32.mrf.mxu0  ;;  %2045 = vmatpush1.msra.mxu0 %v1980_v2  ;;  %v1996_v13 = vld [vmem:[%s4305_s9 + $0xa8] sm:$0xff] }
 0x49d   : > { %v1635_v7 = vadd.f32 %v2808_v5, %v1634_v3  ;;  %v1979_v3 = vld [vmem:[%s4305_s9 + $0x20] sm:$0xff]  ;;  %2046 = vmatprep.subr.mxu0 %v3216_v1 }
 0x49e   : > { %v1636_v4 = vpop.f32.mrf.mxu0  ;;  %2047 = vmatpush1.msra.mxu0 %v1979_v3 }
 0x49f   : > { %v1651_v12 = vmax.f32 %v1635_v7, 0.0  ;;  %v1978_v4 = vld [vmem:[%s4305_s9 + $0x18] sm:$0xff]  ;;  %2048 = vmatprep.subr.mxu0 %v3216_v1  ;;  %v1975_v7 = vld [vmem:[%s4305_s9] sm:$0xff] }
 0x4a0   : > { %v1639_v6 = vpop.f32.mrf.mxu0  ;;  %2049 = vmatpush1.msra.mxu0 %v1978_v4 }
 0x4a1   : > { %v1640_v9 = vadd.f32 %v2808_v5, %v1639_v6  ;;  %v1977_v5 = vld [vmem:[%s4305_s9 + $0x10] sm:$0xff]  ;;  %2050 = vmatprep.subr.mxu0 %v3216_v1  ;;  %v1976_v6 = vld [vmem:[%s4305_s9 + $0x8] sm:$0xff] }
 0x4a2   : > { %v1641_v11 = vpop.f32.mrf.mxu0  ;;  %2051 = vmatpush1.msra.mxu0 %v1977_v5 }
 0x4a3   : > { %v1652_v14 = vmax.f32 %v1640_v9, 0.0  ;;  %2052 = vmatprep.subr.mxu0 %v3216_v1  ;;  %v1998_v9 = vld [vmem:[%s4305_s9 + $0xb8] sm:$0xff]  ;;  %v1997_v11 = vld [vmem:[%s4305_s9 + $0xb0] sm:$0xff] }
 0x4a4   : > { %2053 = vmatpush1.msra.mxu0 %v1976_v6 }
 0x4a5   : > { %3019 = vmatprep.subr.msk.mxu1 %vm1078_vm5, %v1652_v14  ;;  %2054 = vmatprep.subr.mxu0 %v3216_v1 }
 0x4a6   : > { %3020 = vmatpush3.msk.msra.mxu1 %vm1078_vm5, %v1652_v14  ;;  %2055 = vmatpush1.msra.mxu0 %v1975_v7  ;;  %v1995_v14 = vld [vmem:[%s4305_s9 + $0xa0] sm:$0xff] }
 0x4a7   : > { %3021 = vmatprep.subr.mxu1 %v1651_v12  ;;  %2072 = vmatprep.subr.mxu0 %v3216_v1 }
 0x4a8   : > { %3022 = vmatpush3.msra.mxu1 %v1651_v12  ;;  %2073 = vmatpush2.msra.mxu0 %v1998_v9  ;;  %v1993_v12 = vld [vmem:[%s4305_s9 + $0x90] sm:$0xff] }
 0x4a9   : > { %3023 = vmatprep.subr.mxu1 %v1650_v10  ;;  %2074 = vmatprep.subr.mxu0 %v3216_v1 }
 0x4aa   : > { %3024 = vmatpush3.msra.mxu1 %v1650_v10  ;;  %2075 = vmatpush2.msra.mxu0 %v1997_v11  ;;  %v1991_v10 = vld [vmem:[%s4305_s9 + $0x80] sm:$0xff] }
 0x4ab   : > { %3025 = vmatprep.subr.mxu1 %v1649_v8  ;;  %2076 = vmatprep.subr.mxu0 %v3216_v1 }
 0x4ac   : > { %3026 = vmatpush3.msra.mxu1 %v1649_v8  ;;  %2077 = vmatpush2.msra.mxu0 %v1996_v13  ;;  %v2826_v13 = vld [vmem:[%s4306_s10] ss:$0 sm:$0xff] }
 0x4ad   : > { %3027 = vmatprep.subr.mxu1 %v1648_v19  ;;  %2078 = vmatprep.subr.mxu0 %v3216_v1 }
 0x4ae   : > { %3028 = vmatpush3.msra.mxu1 %v1648_v19  ;;  %2079 = vmatpush2.msra.mxu0 %v1995_v14 }
 0x4af   : > { %3029 = vmatprep.subr.mxu1 %v1647_v21  ;;  %2080 = vmatprep.subr.mxu0 %v3216_v1 }
 0x4b0   : > { %3030 = vmatpush3.msra.mxu1 %v1647_v21  ;;  %2081 = vmatpush2.msra.mxu0 %v1994_v15 }
 0x4b1   : > { %3031 = vmatprep.subr.mxu1 %v1646_v23  ;;  %2082 = vmatprep.subr.mxu0 %v3216_v1 }
 0x4b2   : > { %3032 = vmatpush3.msra.mxu1 %v1646_v23  ;;  %2083 = vmatpush2.msra.mxu0 %v1993_v12 }
 0x4b3   : > { %3033 = vmatprep.subr.mxu1 %v1645_v25  ;;  %2084 = vmatprep.subr.mxu0 %v3216_v1 }
 0x4b4   : > { %3034 = vmatpush3.msra.mxu1 %v1645_v25  ;;  %2085 = vmatpush2.msra.mxu0 %v1992_v16 }
 0x4b5   : > { %3035 = vmatprep.subr.mxu1 %v1644_v26  ;;  %2086 = vmatprep.subr.mxu0 %v3216_v1 }
 0x4b6   : > { %3036 = vmatpush3.msra.mxu1 %v1644_v26  ;;  %2087 = vmatpush2.msra.mxu0 %v1991_v10 }
 0x4b7   : > { %3037 = vmatprep.subr.mxu1 %v1643_v27  ;;  %3176 = vmatprep.subr.mxu0 %v3216_v1 }
 0x4b8   : > { %3038 = vmatpush3.msra.mxu1 %v1643_v27 }
 0x4b9   : > { %3040 = vmatmul.mubr.msk.f32.vlgmr.msra.gmra.mxu1 %vm1659_vm7, %v1654_v28  ;;  %3048 = vmatprep.subr.mxu1 %v1791_v29 }
 0x4ba   : > { %3042 = vmatprep.mubr.msk.f32.mxu1 %vm1659_vm7, %v1655_v30  ;;  %3049 = vmatpush3.msra.mxu1 %v1791_v29 }
 0x4bb   : > { %3050 = vmatprep.subr.mxu1 %v1790_v31 }
 0x4bc   : > { %3051 = vmatpush3.msra.mxu1 %v1790_v31 }
 0x4bd   : > { %3043 = vmatmul.mubr.msk.f32.gmra.mxu1 %vm1659_vm7, %v1656_v32  ;;  %3052 = vmatprep.subr.mxu1 %v1789_v33 }
 0x4be   : > { %3045 = vmatprep.mubr.msk.f32.mxu1 %vm1659_vm7, %v1657_v34  ;;  %3053 = vmatpush3.msra.mxu1 %v1789_v33 }
 0x4bf   : > { %3054 = vmatprep.subr.mxu1 %v1788_v35 }
 0x4c0   : > { %3055 = vmatpush3.msra.mxu1 %v1788_v35 }
 0x4c1   : > { %3046 = vmatmul.mubr.msk.f32.gmra.mxu1 %vm1659_vm7, %v1658_v36  ;;  %3056 = vmatprep.subr.mxu1 %v1787_v37 }
 0x4c2   : > { %3057 = vmatpush3.msra.mxu1 %v1787_v37 }
 0x4c3   : > { %3058 = vmatprep.subr.mxu1 %v1786_v38 }
 0x4c4   : > { %3059 = vmatpush3.msra.mxu1 %v1786_v38 }
 0x4c5   : > { %3060 = vmatprep.subr.mxu1 %v1785_v39 }
 0x4c6   : > { %3061 = vmatpush3.msra.mxu1 %v1785_v39 }
 0x4c7   : > { %3062 = vmatprep.subr.mxu1 %v1784_v40 }
 0x4c8   : > { %3063 = vmatpush3.msra.mxu1 %v1784_v40 }
 0x4c9   : > { %3064 = vmatprep.subr.mxu1 %v1783_v41 }
 0x4ca   : > { %3065 = vmatpush3.msra.mxu1 %v1783_v41 }
 0x4cb   : > { %3066 = vmatprep.subr.mxu1 %v1782_v42 }
 0x4cc   : > { %3067 = vmatpush3.msra.mxu1 %v1782_v42 }
 0x4cd   : > { %3068 = vmatprep.subr.mxu1 %v1781_v43 }
 0x4ce   : > { %3069 = vmatpush3.msra.mxu1 %v1781_v43 }
 0x4cf   : > { %3070 = vmatprep.subr.mxu1 %v1780_v44 }
 0x4d0   : > { %3071 = vmatpush3.msra.mxu1 %v1780_v44 }
 0x4d1   : > { %3072 = vmatprep.subr.mxu1 %v1779_v45 }
 0x4d2   : > { %3073 = vmatpush3.msra.mxu1 %v1779_v45 }
 0x4d3   : > { %3074 = vmatprep.subr.mxu1 %v1778_v46 }
 0x4d4   : > { %3075 = vmatpush3.msra.mxu1 %v1778_v46 }
 0x4d5   : > { %3076 = vmatprep.subr.mxu1 %v1777_v47 }
 0x4d6   : > { %3077 = vmatpush3.msra.mxu1 %v1777_v47 }
 0x4d7   : > { %3078 = vmatprep.subr.mxu1 %v1776_v48 }
 0x4d8   : > { %3079 = vmatpush3.msra.mxu1 %v1776_v48 }
 0x579   : > { %v3041_v49 = vpop.f32.mrf.mxu1 }
 0x57b   : > { %v1747_v50 = vpop.f32.mrf.mxu1 }
 0x57c   : > { %3080 = vmatprep.mubr.f32.mxu1 %v1747_v50 }
 0x57d   : > { %v3044_v51 = vpop.f32.mrf.mxu1  ;;  %3081 = vmatmul.mubr.f32.vlgmr.msra.gmra.mxu1 %v3041_v49 }
 0x57f   : > { %v1757_v52 = vpop.f32.mrf.mxu1 }
 0x580   : > { %3083 = vmatprep.mubr.f32.mxu1 %v1757_v52 }
 0x581   : > { %v3047_v53 = vpop.f32.mrf.mxu1  ;;  %3084 = vmatmul.mubr.f32.gmra.mxu1 %v3044_v51 }
 0x583   : > { %v1767_v54 = vpop.f32.mrf.mxu1 }
 0x584   : > { %3086 = vmatprep.mubr.f32.mxu1 %v1767_v54 }
 0x585   : > { %3087 = vmatmul.mubr.f32.gmra.mxu1 %v3047_v53 }
 0x586   : > { %3101 = vmatprep.mubr.msk.f32.mxu1 %vm2129_vm8, %v2125_v62 }
 0x63d   : > { %v3082_v17 = vpop.f32.mrf.mxu1 }
 0x63e   : > { %1888 = vst.msk [vmem:[%s4076_s1 + $0x8] sm:$0xff] %vm567_vm0, %v3082_v17  ;;  %1894 = vst.msk [vmem:[#allocation4 + $0x10] sm:$0xff] %vm567_vm0, %v3082_v17  ;;  %v1906_v18 = vrot.slane %v3082_v17, 1  ;;  %v1941_v19 = vrot.slane %v3082_v17, 2 }
 0x63f   : > { %v1858_v8 = vpop.f32.mrf.mxu1 }
 0x640   : > { %1887 = vst.msk [vmem:[%s4076_s1] sm:$0xff] %vm567_vm0, %v1858_v8  ;;  %v1905_v20 = vrot.slane %v1858_v8, 1  ;;  %v1940_v21 = vrot.slane %v1858_v8, 2  ;;  %1893 = vst.msk [vmem:[#allocation4] sm:$0xff] %vm567_vm0, %v1858_v8 }
 0x641   : > { %v3085_v22 = vpop.f32.mrf.mxu1 }
 0x642   : > { %v1942_v23 = vsel %vm1078_vm5, %v1940_v21, %v1941_v19  ;;  %1890 = vst.msk [vmem:[%s4076_s1 + $0x18] sm:$0xff] %vm567_vm0, %v3085_v22  ;;  %1896 = vst.msk [vmem:[#allocation4 + $0x30] sm:$0xff] %vm567_vm0, %v3085_v22  ;;  %v1907_v24 = vsel %vm1348_vm6, %v1905_v20, %v1906_v18  ;;  %v1945_v26 = vrot.slane %v3085_v22, 2  ;;  %v1910_v29 = vrot.slane %v3085_v22, 1 }
 0x643   : > { %1957 = vst.msk [vmem:[#allocation4 + $0x8] sm:$0xff] %vm567_vm0, %v1942_v23  ;;  %1916 = vrot.lane.b32.xlu0 %v1907_v24, %s3217_s27  ;;  %v1868_v25 = vpop.f32.mrf.mxu1 }
 0x644   : > { %1889 = vst.msk [vmem:[%s4076_s1 + $0x10] sm:$0xff] %vm567_vm0, %v1868_v25  ;;  %v1908_v27 = vrot.slane %v1868_v25, 1  ;;  %v1943_v28 = vrot.slane %v1868_v25, 2  ;;  %1895 = vst.msk [vmem:[#allocation4 + $0x20] sm:$0xff] %vm567_vm0, %v1868_v25  ;;  %v2126_v25 = vld [vmem:[%s4307_s11 + $0x8] sm:$0xff] }
 0x645   : > { %v3088_v30 = vpop.f32.mrf.mxu1 }
 0x646   : > { %v1944_v31 = vsel %vm1078_vm5, %v1941_v19, %v1943_v28  ;;  %v1946_v32 = vsel %vm1078_vm5, %v1943_v28, %v1945_v26  ;;  %1892 = vst.msk [vmem:[%s4076_s1 + $0x28] sm:$0xff] %vm567_vm0, %v3088_v30  ;;  %v1914_v33 = vrot.slane %v3088_v30, 1  ;;  %v1949_v34 = vrot.slane %v3088_v30, 2  ;;  %v2236_v28 = vld [vmem:[%s4308_s12 + $0x30] sm:$0xff] }
 0x647   : > { %1898 = vst.msk [vmem:[#allocation4 + $0x50] sm:$0x3f] %vm585_vm1, %v3088_v30  ;;  %v1911_v35 = vsel %vm1348_vm6, %v1908_v27, %v1910_v29  ;;  %v1909_v36 = vsel %vm1348_vm6, %v1906_v18, %v1908_v27  ;;  %v1878_v37 = vpop.f32.mrf.mxu1  ;;  %v2127_v27 = vld [vmem:[%s4307_s11 + $0x10] sm:$0xff]  ;;  %v2235_v30 = vld [vmem:[%s4308_s12 + $0x28] sm:$0xff] }
 0x648   : > { %1958 = vst.msk [vmem:[#allocation4 + $0x18] sm:$0xff] %vm567_vm0, %v1944_v31  ;;  %1959 = vst.msk [vmem:[#allocation4 + $0x28] sm:$0xff] %vm567_vm0, %v1946_v32  ;;  %1920 = vrot.lane.b32.xlu0 %v1911_v35, %s3217_s27  ;;  %1918 = vrot.lane.b32.xlu1 %v1909_v36, %s3217_s27  ;;  %v1912_v38 = vrot.slane %v1878_v37, 1  ;;  %v1947_v39 = vrot.slane %v1878_v37, 2  ;;  %v2234_v31 = vld [vmem:[%s4308_s12 + $0x20] sm:$0xff]  ;;  %v2233_v32 = vld [vmem:[%s4308_s12 + $0x18] sm:$0xff] }
 0x649   : > { %1962 = vst.msk [vmem:[#allocation4 + $0x58] sm:$0x3f] %vm585_vm1, %v1949_v34  ;;  %v2230_v35 = vld [vmem:[%s4308_s12] sm:$0xff]  ;;  %vm3219_vm1 = vmmov 0  }
 0x64a   : > { %1891 = vst.msk [vmem:[%s4076_s1 + $0x20] sm:$0xff] %vm567_vm0, %v1878_v37  ;;  %1897 = vst.msk [vmem:[#allocation4 + $0x40] sm:$0xff] %vm567_vm0, %v1878_v37  ;;  %v1948_v40 = vsel %vm1078_vm5, %v1945_v26, %v1947_v39  ;;  %v1950_v41 = vsel %vm1078_vm5, %v1947_v39, %v1949_v34  ;;  %v1964_v42 = vld [vmem:[#allocation4 + $0x8] sm:$0xff]  ;;  %v1915_v43 = vsel %vm1348_vm6, %v1912_v38, %v1914_v33  ;;  %v2237_v26 = vld [vmem:[%s4308_s12 + $0x38] sm:$0xff] }
 0x64b   : > { %v1913_v44 = vsel %vm1348_vm6, %v1910_v29, %v1912_v38  ;;  %1960 = vst.msk [vmem:[#allocation4 + $0x38] sm:$0xff] %vm567_vm0, %v1948_v40  ;;  %1961 = vst.msk [vmem:[#allocation4 + $0x48] sm:$0xff] %vm567_vm0, %v1950_v41  ;;  %2827 = vmatprep.mubr.msk.f32.mxu0 %vm567_vm0, %v1964_v42  ;;  %v2128_v29 = vld [vmem:[%s4307_s11 + $0x18] sm:$0xff]  ;;  %v2231_v34 = vld [vmem:[%s4308_s12 + $0x8] sm:$0xff] }
 0x64c   : > { %1924 = vrot.lane.b32.xlu0 %v1915_v43, %s3217_s27  ;;  %1922 = vrot.lane.b32.xlu1 %v1913_v44, %s3217_s27  ;;  %v2401_v40 = vld [vmem:[%s4309_s13 + $0x58] sm:$0xff]  ;;  %v2400_v41 = vld [vmem:[%s4309_s13 + $0x50] sm:$0xff] }
 0x64d   : > { %v2399_v42 = vld [vmem:[%s4309_s13 + $0x48] sm:$0xff]  ;;  %v2398_v43 = vld [vmem:[%s4309_s13 + $0x40] sm:$0xff]  ;;  %v2397_v44 = vld [vmem:[%s4309_s13 + $0x38] sm:$0xff] }
 0x64f   : > { %v1966_v51 = vld [vmem:[#allocation4 + $0x18] sm:$0xff]  ;;  %v1968_v54 = vld [vmem:[#allocation4 + $0x28] sm:$0xff] }
 0x650   : > { %1926 = vrot.lane.b32.xlu1 %v1914_v33, %s3217_s27  ;;  %v1974_v60 = vld [vmem:[#allocation4 + $0x58] sm:$0x3f]  ;;  %v2232_v33 = vld [vmem:[%s4308_s12 + $0x10] sm:$0xff] }
 0x652   : > { %v1970_v56 = vld [vmem:[#allocation4 + $0x38] sm:$0xff]  ;;  %v1972_v58 = vld [vmem:[#allocation4 + $0x48] sm:$0xff] }
 0x6b5   : > { %v1917_v45 = vpop.permute.xlu0 %1916 }
 0x6b6   : > { %1934 = vst.msk [vmem:[#allocation4] sm:$0xff] %vm677_vm2, %v1917_v45  ;;  %v2396_v45 = vld [vmem:[%s4309_s13 + $0x30] sm:$0xff] }
 0x6ba   : > { %v1921_v46 = vpop.permute.xlu0 %1920  ;;  %v1919_v47 = vpop.permute.xlu1 %1918 }
 0x6bb   : > { %1936 = vst.msk [vmem:[#allocation4 + $0x20] sm:$0xff] %vm677_vm2, %v1921_v46  ;;  %1935 = vst.msk [vmem:[#allocation4 + $0x10] sm:$0xff] %vm677_vm2, %v1919_v47  ;;  %v2395_v46 = vld [vmem:[%s4309_s13 + $0x28] sm:$0xff]  ;;  %v2394_v47 = vld [vmem:[%s4309_s13 + $0x20] sm:$0xff] }
 0x6bd   : > { %v1963_v48 = vld [vmem:[#allocation4] sm:$0xff] }
 0x6be   : > { %v1925_v49 = vpop.permute.xlu0 %1924  ;;  %v1923_v50 = vpop.permute.xlu1 %1922  ;;  %2089 = vmatmul.mubr.f32.vlgmr.msra.gmra.mxu0 %v1963_v48  ;;  %v2393_v48 = vld [vmem:[%s4309_s13 + $0x18] sm:$0xff] }
 0x6bf   : > { %1938 = vst.msk [vmem:[#allocation4 + $0x40] sm:$0xff] %vm677_vm2, %v1925_v49  ;;  %1937 = vst.msk [vmem:[#allocation4 + $0x30] sm:$0xff] %vm677_vm2, %v1923_v50  ;;  %2828 = vmatprep.mubr.msk.f32.mxu0 %vm567_vm0, %v1966_v51  ;;  %v2392_v50 = vld [vmem:[%s4309_s13 + $0x10] sm:$0xff]  ;;  %vm2514_vm2 = vcmask 244736  }
 0x6c2   : > { %v1927_v52 = vpop.permute.xlu1 %1926  ;;  %v1965_v53 = vld [vmem:[#allocation4 + $0x10] sm:$0xff]  ;;  %v1967_v55 = vld [vmem:[#allocation4 + $0x20] sm:$0xff] }
 0x6c3   : > { %1939 = vst.msk [vmem:[#allocation4 + $0x50] sm:$0x3f] %vm695_vm3, %v1927_v52  ;;  %2094 = vmatmul.mubr.f32.gmra.mxu0 %v1965_v53  ;;  %v2391_v52 = vld [vmem:[%s4309_s13 + $0x8] sm:$0xff]  ;;  %v2390_v53 = vld [vmem:[%s4309_s13] sm:$0xff]  ;;  %vm2712_vm3 = vcmask 917248  }
 0x6c4   : > { %2829 = vmatprep.mubr.msk.f32.mxu0 %vm567_vm0, %v1968_v54 }
 0x6c6   : > { %v1969_v57 = vld [vmem:[#allocation4 + $0x30] sm:$0xff]  ;;  %v1971_v59 = vld [vmem:[#allocation4 + $0x40] sm:$0xff] }
 0x6c7   : > { %2099 = vmatmul.mubr.f32.gmra.mxu0 %v1967_v55 }
 0x6c8   : > { %2830 = vmatprep.mubr.msk.f32.mxu0 %vm567_vm0, %v1970_v56 }
 0x6ca   : > { %v1973_v61 = vld [vmem:[#allocation4 + $0x50] sm:$0x3f] }
 0x6cb   : > { %2104 = vmatmul.mubr.f32.gmra.mxu0 %v1969_v57 }
 0x6cc   : > { %2831 = vmatprep.mubr.msk.f32.mxu0 %vm567_vm0, %v1972_v58 }
 0x6cf   : > { %2109 = vmatmul.mubr.f32.gmra.mxu0 %v1971_v59 }
 0x6d0   : > { %2832 = vmatprep.mubr.msk.f32.mxu0 %vm567_vm0, %v1974_v60 }
 0x6d3   : > { %2114 = vmatmul.mubr.f32.gmra.mxu0 %v1973_v61 }
 0x6d4   : > { %3184 = vmatprep.mubr.msk.f32.mxu0 %vm3219_vm1, %v3216_v1 }
 0x77e   : > { %v2090_v63 = vpop.f32.mrf.mxu0 }
 0x77f   : > { %v2091_v21 = vadd.f32 %v2826_v13, %v2090_v63 }
 0x780   : > { %v2092_v0 = vpop.f32.mrf.mxu0 }
 0x781   : > { %v2119_v24 = vmax.f32 %v2091_v21, 0.0 }
 0x783   : > { %v2095_v2 = vpop.f32.mrf.mxu0 }
 0x784   : > { %v2096_v19 = vadd.f32 %v2826_v13, %v2095_v2 }
 0x785   : > { %v2097_v3 = vpop.f32.mrf.mxu0 }
 0x786   : > { %v2120_v23 = vmax.f32 %v2096_v19, 0.0 }
 0x787   : > { %v2100_v4 = vpop.f32.mrf.mxu0 }
 0x788   : > { %v2101_v8 = vadd.f32 %v2826_v13, %v2100_v4 }
 0x789   : > { %v2102_v5 = vpop.f32.mrf.mxu0 }
 0x78a   : > { %v2121_v22 = vmax.f32 %v2101_v8, 0.0  ;;  %v2610_v5 = vld [vmem:[%s4312_s16 + $0x18] sm:$0xff] }
 0x78b   : > { %v2105_v6 = vpop.f32.mrf.mxu0  ;;  %3177 = vmatpush3.msra.mxu0 %v2610_v5 }
 0x78c   : > { %v2106_v10 = vadd.f32 %v2826_v13, %v2105_v6  ;;  %v2609_v6 = vld [vmem:[%s4312_s16 + $0x10] sm:$0xff]  ;;  %3178 = vmatprep.subr.mxu0 %v3216_v1 }
 0x78d   : > { %v2107_v7 = vpop.f32.mrf.mxu0  ;;  %3179 = vmatpush3.msra.mxu0 %v2609_v6 }
 0x78e   : > { %v2122_v20 = vmax.f32 %v2106_v10, 0.0  ;;  %v2608_v7 = vld [vmem:[%s4312_s16 + $0x8] sm:$0xff]  ;;  %3180 = vmatprep.subr.mxu0 %v3216_v1 }
 0x78f   : > { %v2110_v9 = vpop.f32.mrf.mxu0  ;;  %3181 = vmatpush3.msra.mxu0 %v2608_v7 }
 0x790   : > { %v2111_v15 = vadd.f32 %v2826_v13, %v2110_v9  ;;  %v2607_v9 = vld [vmem:[%s4312_s16] sm:$0xff]  ;;  %3182 = vmatprep.subr.mxu0 %v3216_v1 }
 0x791   : > { %v2112_v11 = vpop.f32.mrf.mxu0  ;;  %3183 = vmatpush3.msra.mxu0 %v2607_v9 }
 0x792   : > { %v2123_v18 = vmax.f32 %v2111_v15, 0.0 }
 0x793   : > { %v2115_v14 = vpop.f32.mrf.mxu0 }
 0x794   : > { %v2116_v12 = vadd.f32 %v2826_v13, %v2115_v14  ;;  %v2842_v14 = vld [vmem:[%s4310_s14] ss:$0 sm:$0xff] }
 0x795   : > { %v2117_v16 = vpop.f32.mrf.mxu0 }
 0x796   : > { %v2124_v17 = vmax.f32 %v2116_v12, 0.0 }
 0x798   : > { %3089 = vmatprep.subr.msk.mxu1 %vm1078_vm5, %v2124_v17 }
 0x799   : > { %3090 = vmatpush3.msk.msra.mxu1 %vm1078_vm5, %v2124_v17 }
 0x79a   : > { %3091 = vmatprep.subr.mxu1 %v2123_v18 }
 0x79b   : > { %3092 = vmatpush3.msra.mxu1 %v2123_v18 }
 0x79c   : > { %3093 = vmatprep.subr.mxu1 %v2122_v20 }
 0x79d   : > { %3094 = vmatpush3.msra.mxu1 %v2122_v20 }
 0x79e   : > { %3095 = vmatprep.subr.mxu1 %v2121_v22 }
 0x79f   : > { %3096 = vmatpush3.msra.mxu1 %v2121_v22  ;;  %v2511_v22 = vld [vmem:[%s4311_s15] sm:$0xff] }
 0x7a0   : > { %3097 = vmatprep.subr.mxu1 %v2120_v23 }
 0x7a1   : > { %3098 = vmatpush3.msra.mxu1 %v2120_v23  ;;  %v2512_v23 = vld [vmem:[%s4311_s15 + $0x8] sm:$0xff] }
 0x7a2   : > { %3099 = vmatprep.subr.mxu1 %v2119_v24 }
 0x7a3   : > { %3100 = vmatpush3.msra.mxu1 %v2119_v24  ;;  %v2513_v24 = vld [vmem:[%s4311_s15 + $0x10] sm:$0xff] }
 0x7a4   : > { %3102 = vmatmul.mubr.msk.f32.vlgmr.msra.gmra.mxu1 %vm2129_vm8, %v2126_v25  ;;  %3107 = vmatprep.subr.mxu1 %v2237_v26 }
 0x7a5   : > { %3104 = vmatprep.mubr.msk.f32.mxu1 %vm2129_vm8, %v2127_v27  ;;  %3108 = vmatpush3.msra.mxu1 %v2237_v26 }
 0x7a6   : > { %3109 = vmatprep.subr.mxu1 %v2236_v28 }
 0x7a7   : > { %3110 = vmatpush3.msra.mxu1 %v2236_v28 }
 0x7a8   : > { %3105 = vmatmul.mubr.msk.f32.gmra.mxu1 %vm2129_vm8, %v2128_v29  ;;  %3111 = vmatprep.subr.mxu1 %v2235_v30 }
 0x7a9   : > { %3112 = vmatpush3.msra.mxu1 %v2235_v30 }
 0x7aa   : > { %3113 = vmatprep.subr.mxu1 %v2234_v31 }
 0x7ab   : > { %3114 = vmatpush3.msra.mxu1 %v2234_v31 }
 0x7ac   : > { %3115 = vmatprep.subr.mxu1 %v2233_v32 }
 0x7ad   : > { %3116 = vmatpush3.msra.mxu1 %v2233_v32 }
 0x7ae   : > { %3117 = vmatprep.subr.mxu1 %v2232_v33 }
 0x7af   : > { %3118 = vmatpush3.msra.mxu1 %v2232_v33 }
 0x7b0   : > { %3119 = vmatprep.subr.mxu1 %v2231_v34 }
 0x7b1   : > { %3120 = vmatpush3.msra.mxu1 %v2231_v34 }
 0x7b2   : > { %3121 = vmatprep.subr.mxu1 %v2230_v35 }
 0x7b3   : > { %3122 = vmatpush3.msra.mxu1 %v2230_v35 }
 0x7b4   : > { %3129 = vmatprep.subr.mxu1 %v2401_v40 }
 0x864   : > { %v3103_v36 = vpop.f32.mrf.mxu1 }
 0x866   : > { %v2211_v37 = vpop.f32.mrf.mxu1 }
 0x867   : > { %3123 = vmatprep.mubr.msk.f32.mxu1 %vm567_vm0, %v2211_v37 }
 0x868   : > { %v3106_v38 = vpop.f32.mrf.mxu1  ;;  %3124 = vmatmul.mubr.msk.f32.vlgmr.msra.gmra.mxu1 %vm567_vm0, %v3103_v36 }
 0x869   : > { %3130 = vmatpush3.msra.mxu1 %v2401_v40 }
 0x86a   : > { %v2221_v39 = vpop.f32.mrf.mxu1  ;;  %3131 = vmatprep.subr.mxu1 %v2400_v41 }
 0x86b   : > { %3126 = vmatprep.mubr.msk.f32.mxu1 %vm567_vm0, %v2221_v39  ;;  %3132 = vmatpush3.msra.mxu1 %v2400_v41 }
 0x86c   : > { %3127 = vmatmul.mubr.msk.f32.gmra.mxu1 %vm567_vm0, %v3106_v38  ;;  %3133 = vmatprep.subr.mxu1 %v2399_v42  ;;  %vm2409_vm0 = vcmask 785408  }
 0x86d   : > { %3134 = vmatpush3.msra.mxu1 %v2399_v42 }
 0x86e   : > { %3135 = vmatprep.subr.mxu1 %v2398_v43 }
 0x86f   : > { %3136 = vmatpush3.msra.mxu1 %v2398_v43 }
 0x870   : > { %3137 = vmatprep.subr.mxu1 %v2397_v44 }
 0x871   : > { %3138 = vmatpush3.msra.mxu1 %v2397_v44 }
 0x872   : > { %3139 = vmatprep.subr.mxu1 %v2396_v45 }
 0x873   : > { %3140 = vmatpush3.msra.mxu1 %v2396_v45 }
 0x874   : > { %3141 = vmatprep.subr.mxu1 %v2395_v46 }
 0x875   : > { %3142 = vmatpush3.msra.mxu1 %v2395_v46 }
 0x876   : > { %3143 = vmatprep.subr.mxu1 %v2394_v47 }
 0x877   : > { %3144 = vmatpush3.msra.mxu1 %v2394_v47 }
 0x878   : > { %3145 = vmatprep.subr.mxu1 %v2393_v48 }
 0x879   : > { %3146 = vmatpush3.msra.mxu1 %v2393_v48 }
 0x87a   : > { %3147 = vmatprep.subr.mxu1 %v2392_v50 }
 0x87b   : > { %3148 = vmatpush3.msra.mxu1 %v2392_v50 }
 0x87c   : > { %3149 = vmatprep.subr.mxu1 %v2391_v52 }
 0x87d   : > { %3150 = vmatpush3.msra.mxu1 %v2391_v52 }
 0x87e   : > { %3151 = vmatprep.subr.mxu1 %v2390_v53 }
 0x87f   : > { %3152 = vmatpush3.msra.mxu1 %v2390_v53 }
 0x880   : > { %3159 = vmatprep.subr.mxu1 %v3216_v1 }
 0x928   : > { %v3125_v49 = vpop.f32.mrf.mxu1 }
 0x929   : > { %2358 = vst.msk [vmem:[#allocation5 + $0x8] sm:$0xff] %vm2356_vm9, %v3125_v49  ;;  %2364 = vrot.lane.b32.xlu1 %v3125_v49, %s3218_s29 }
 0x92a   : > { %v2316_v51 = vpop.f32.mrf.mxu1 }
 0x92b   : > { %2357 = vst.msk [vmem:[#allocation5] sm:$0xff] %vm2356_vm9, %v2316_v51  ;;  %2362 = vrot.lane.b32.xlu0 %v2316_v51, %s3218_s29 }
 0x92c   : > { %v3128_v54 = vpop.f32.mrf.mxu1 }
 0x92d   : > { %2361 = vst.msk [vmem:[#allocation5 + $0x18] sm:$0x3f] %vm2360_vm10, %v3128_v54  ;;  %2341 = vrot.lane.b32.xlu1 %v3125_v49, %s3217_s27 }
 0x92e   : > { %v2326_v55 = vpop.f32.mrf.mxu1 }
 0x92f   : > { %2359 = vst.msk [vmem:[#allocation5 + $0x10] sm:$0xff] %vm2356_vm9, %v2326_v55  ;;  %2339 = vrot.lane.b32.xlu0 %v2316_v51, %s3217_s27 }
 0x931   : > { %2343 = vrot.lane.b32.xlu1 %v2326_v55, %s3217_s27 }
 0x933   : > { %2366 = vrot.lane.b32.xlu0 %v2326_v55, %s3218_s29 }
 0x935   : > { %2345 = vrot.lane.b32.xlu1 %v3128_v54, %s3217_s27 }
 0x937   : > { %2368 = vrot.lane.b32.xlu0 %v3128_v54, %s3218_s29 }
 0x99b   : > { %v2365_v56 = vpop.permute.xlu1 %2364 }
 0x99c   : > { %2377 = vst.msk [vmem:[#allocation5 + $0x7] sm:$0xff] %vm2376_vm11, %v2365_v56 }
 0x99d   : > { %v2363_v57 = vpop.permute.xlu0 %2362 }
 0x99e   : > { %2375 = vst.msk [vmem:[#allocation5 - $0x1] sm:$0xfe] %vm2374_vm12, %v2363_v57 }
 0x99f   : > { %v2342_v58 = vpop.permute.xlu1 %2341 }
 0x9a0   : > { %2353 = vst.msk [vmem:[%s4076_s1 + $0x8] sm:$0xff] %vm2351_vm13, %v2342_v58  ;;  %2383 = vst.msk [vmem:[#allocation5 + $0x6] sm:$0xff] %vm2351_vm13, %v2342_v58 }
 0x9a1   : > { %v2340_v59 = vpop.permute.xlu0 %2339 }
 0x9a2   : > { %2352 = vst.msk [vmem:[%s4076_s1] sm:$0xff] %vm2351_vm13, %v2340_v59 }
 0x9a3   : > { %2382 = vst.msk [vmem:[#allocation5 - $0x2] sm:$0xfc] %vm2381_vm14, %v2340_v59  ;;  %v2344_v60 = vpop.permute.xlu1 %2343 }
 0x9a4   : > { %2354 = vst.msk [vmem:[%s4076_s1 + $0x10] sm:$0xff] %vm2351_vm13, %v2344_v60 }
 0x9a5   : > { %v2367_v61 = vpop.permute.xlu0 %2366 }
 0x9a6   : > { %2378 = vst.msk [vmem:[#allocation5 + $0xf] sm:$0xff] %vm2376_vm11, %v2367_v61 }
 0x9a7   : > { %2384 = vst.msk [vmem:[#allocation5 + $0xe] sm:$0xff] %vm2351_vm13, %v2344_v60  ;;  %v2346_v62 = vpop.permute.xlu1 %2345 }
 0x9a8   : > { %2355 = vst.msk [vmem:[%s4076_s1 + $0x18] sm:$0xff] %vm2351_vm13, %v2346_v62 }
 0x9a9   : > { %v2369_v63 = vpop.permute.xlu0 %2368 }
 0x9aa   : > { %v2386_v0 = vld [vmem:[#allocation5] sm:$0xff]  ;;  %2380 = vst.msk [vmem:[#allocation5 + $0x17] sm:$0x7f] %vm2379_vm15, %v2369_v63 }
 0x9ab   : > { %3153 = vmatprep.mubr.msk.f32.mxu1 %vm2409_vm0, %v2386_v0  ;;  %2385 = vst.msk [vmem:[#allocation5 + $0x16] sm:$0xff] %vm2351_vm13, %v2346_v62 }
 0x9ae   : > { %v2387_v2 = vld [vmem:[#allocation5 + $0x8] sm:$0xff] }
 0x9af   : > { %3154 = vmatmul.mubr.msk.f32.vlgmr.msra.gmra.mxu1 %vm2409_vm0, %v2387_v2 }
 0x9b2   : > { %v2388_v3 = vld [vmem:[#allocation5 + $0x10] sm:$0xff]  ;;  %v2389_v4 = vld [vmem:[#allocation5 + $0x18] sm:$0x3f] }
 0x9b3   : > { %3156 = vmatprep.mubr.msk.f32.mxu1 %vm2409_vm0, %v2388_v3 }
 0x9b4   : > { %3157 = vmatmul.mubr.msk.f32.gmra.mxu1 %vm2409_vm0, %v2389_v4 }
 0x9b5   : > { %3167 = vmatprep.mubr.msk.f32.mxu1 %vm3219_vm1, %v3216_v1 }
 0xa6f   : > { %v3155_v11 = vpop.f32.mrf.mxu1 }
 0xa70   : > { %v2494_v10 = vadd.f32 %v3155_v11, %v2842_v14 }
 0xa71   : > { %v2488_v13 = vpop.f32.mrf.mxu1 }
 0xa72   : > { %v2489_v18 = vadd.f32 %v2842_v14, %v2488_v13  ;;  %v2508_v20 = vmax.f32 %v2494_v10, 0.0 }
 0xa74   : > { %v3158_v15 = vpop.f32.mrf.mxu1  ;;  %v2507_v21 = vmax.f32 %v2489_v18, 0.0 }
 0xa75   : > { %v2504_v12 = vadd.f32 %v3158_v15, %v2842_v14 }
 0xa76   : > { %v2498_v16 = vpop.f32.mrf.mxu1 }
 0xa77   : > { %v2510_v17 = vmax.f32 %v2504_v12, 0.0  ;;  %v2499_v8 = vadd.f32 %v2842_v14, %v2498_v16 }
 0xa79   : > { %v2509_v19 = vmax.f32 %v2499_v8, 0.0  ;;  %3160 = vmatpush3.msk.msra.mxu1 %vm1078_vm5, %v2510_v17 }
 0xa7a   : > { %3161 = vmatprep.subr.mxu1 %v3216_v1 }
 0xa7b   : > { %3162 = vmatpush3.msra.mxu1 %v2509_v19 }
 0xa7c   : > { %3163 = vmatprep.subr.mxu1 %v3216_v1 }
 0xa7d   : > { %3164 = vmatpush3.msra.mxu1 %v2508_v20 }
 0xa7e   : > { %3165 = vmatprep.subr.mxu1 %v3216_v1 }
 0xa7f   : > { %3166 = vmatpush3.msra.mxu1 %v2507_v21 }
 0xa80   : > { %3168 = vmatmul.mubr.msk.f32.vlgmr.msra.gmra.mxu1 %vm2514_vm2, %v2511_v22 }
 0xa81   : > { %3170 = vmatprep.mubr.msk.f32.mxu1 %vm3219_vm1, %v3216_v1 }
 0xa84   : > { %3171 = vmatmul.mubr.msk.f32.gmra.mxu1 %vm2514_vm2, %v2512_v23 }
 0xa85   : > { %3173 = vmatprep.mubr.msk.f32.mxu1 %vm3219_vm1, %v3216_v1 }
 0xa88   : > { %3174 = vmatmul.mubr.msk.f32.gmra.mxu1 %vm2514_vm2, %v2513_v24 }
 0xb40   : > { %v2593_v25 = vpop.f32.mrf.mxu1 }
 0xb41   : > { %3185 = vmatmul.mubr.msk.f32.vlgmr.msra.gmra.mxu0 %vm2356_vm9, %v2593_v25 }
 0xb42   : > { %v3169_v26 = vpop.f32.mrf.mxu1  ;;  %3187 = vmatprep.mubr.msk.f32.mxu0 %vm3219_vm1, %v3216_v1 }
 0xb44   : > { %v2598_v27 = vpop.f32.mrf.mxu1 }
 0xb45   : > { %3188 = vmatmul.mubr.msk.f32.gmra.mxu0 %vm2356_vm9, %v2598_v27 }
 0xb46   : > { %v3172_v28 = vpop.f32.mrf.mxu1  ;;  %3190 = vmatprep.mubr.msk.f32.mxu0 %vm3219_vm1, %v3216_v1 }
 0xb48   : > { %v2603_v29 = vpop.f32.mrf.mxu1 }
 0xb49   : > { %3191 = vmatmul.mubr.msk.f32.gmra.mxu0 %vm2356_vm9, %v2603_v29 }
 0xb4a   : > { %v3175_v30 = vpop.f32.mrf.mxu1 }
 0xc01   : > { %v2686_v31 = vpop.f32.mrf.mxu0 }
 0xc02   : > { %2703 = vrot.lane.b32.xlu0 %v2686_v31, %s3220_s26 }
 0xc03   : > { %v3186_v32 = vpop.f32.mrf.mxu0 }
 0xc05   : > { %v2691_v33 = vpop.f32.mrf.mxu0 }
 0xc06   : > { %2705 = vrot.lane.b32.xlu1 %v2691_v33, %s3220_s26 }
 0xc07   : > { %v3189_v34 = vpop.f32.mrf.mxu0 }
 0xc09   : > { %v2696_v35 = vpop.f32.mrf.mxu0 }
 0xc0a   : > { %2707 = vrot.lane.b32.xlu0 %v2696_v35, %s3220_s26 }
 0xc0b   : > { %v3192_v36 = vpop.f32.mrf.mxu0 }
 0xc74   : > { %v2704_v37 = vpop.permute.xlu0 %2703 }
 0xc75   : > { %2713 = vst.msk [vmem:[%s4076_s1] sm:$0xff] %vm2712_vm3, %v2704_v37 }
 0xc78   : > { %v2706_v1 = vpop.permute.xlu1 %2705 }
 0xc79   : > { %2714 = vst.msk [vmem:[%s4076_s1 + $0x8] sm:$0xff] %vm2712_vm3, %v2706_v1 }
 0xc7c   : > { %v2708_v38 = vpop.permute.xlu0 %2707 }
 0xc7d   : > { %2715 = vst.msk [vmem:[%s4076_s1 + $0x10] sm:$0xff] %vm2712_vm3, %v2708_v38 }
 0xc7e PF: > { %s27_s24 = sadd.s32 1, %s3214_s24  }
 0xc7f   : > { %p24_p4 = scmp.ge.s32.totalorder %s27_s24, 4  }
 0xc81   :  { %26 = sbr.rel (!%p24_p4) target bundleno = 3 (0x3), region = 118 }

</bundles_post_ra>
